<compile_context>
chip_gen: v5e
topology: v5e:2x2
jax: 0.10.0
libtpu: 0.0.40
codegen_flags: <defaults>
</compile_context>

<pallas_src>
import functools

import jax
import jax.numpy as jnp
from jax.experimental import pallas as pl
from jax.experimental.pallas import tpu as pltpu


def _ctpm_branch_kernel(d_ref, o_ref, c_ref, i_ref, w1_ref, wb_ref, b2_ref,
                        s_ref, sums_ref, *, hp, n_rows, blk_n, n_inner,
                        n_tiles):
    """One (outer, inner) grid step of a CTPM branch.

    d_ref    : (blk_n, D)     feature tile (batch rows on sublanes)
    o_ref    : (1, blk_n)     reward     (lane-dense)
    c_ref    : (1, blk_n)     cost       (lane-dense)
    i_ref    : (1, blk_n)     intensity  (lane-dense)
    w1_ref   : (2*hp, D)      rows [0,hp)=match 1st layer, [hp,2hp)=policy
    wb_ref   : (2*hp, 2)      col 0 = 1st-layer bias, col 1 = 2nd-layer weight
    b2_ref   : (2, 1)         [match-head bias, policy-head bias]
    s_ref    : (1, blk_n)     un-normalized rank-score tile (output)
    sums_ref : (1, 8, blk_n)  lane-wise accumulators, rows 0..2 =
                              [sum s_un, sum s_un*o, sum s_un*c]
    """
    go = pl.program_id(0)                       # outer ("parallel") chunk
    gi = pl.program_id(1)                       # inner ("arbitrary") tile
    t = go * n_inner + gi                       # logical tile id (may be phantom)
    t_c = jnp.minimum(t, n_tiles - 1)           # mirrors the index_map clamp
    start = t_c * blk_n

    @pl.when(gi == 0)
    def _init():
        sums_ref[...] = jnp.zeros_like(sums_ref)

    w1 = w1_ref[...]                            # (2hp, D)
    b1 = wb_ref[:, 0:1]                         # (2hp, 1)
    w2 = wb_ref[:, 1:2]                         # (2hp, 1)
    bm = b2_ref[0:1, :]                         # (1, 1) match-head bias
    bp = b2_ref[1:2, :]                         # (1, 1) policy-head bias

    d = d_ref[...]                              # (blk_n, D)
    # Both heads' first layers in one MXU matmul; the feature transpose is
    # folded into the contraction (w1 dim 1 against d dim 1) -> (2hp, blk_n).
    h = jnp.tanh(
        jax.lax.dot_general(
            w1, d, dimension_numbers=(((1,), (1,)), ((), ())),
            preferred_element_type=jnp.float32) + b1)
    # Second layer: VPU multiply + sublane reduce (no MXU round trip for a
    # dot-product-per-row).
    z = h * w2                                  # (2hp, blk_n)
    s_logit = jnp.sum(z[:hp, :], axis=0, keepdims=True) + bm   # (1, blk_n)
    p_logit = jnp.sum(z[hp:, :], axis=0, keepdims=True) + bp   # (1, blk_n)
    s = jax.nn.sigmoid(s_logit)                 # match score
    p = jax.nn.sigmoid(p_logit)                 # policy score

    sd = jax.nn.sigmoid(i_ref[...] - p)         # likelihood weighting
    lh = sd * (1.0 - sd)
    s_un = s * lh                               # un-normalized rank score

    # Mask lanes past the true row count (remainder tiles / phantom tiles).
    lane = jax.lax.broadcasted_iota(jnp.int32, (1, blk_n), 1)
    s_un = jnp.where(start + lane < n_rows, s_un, 0.0)

    s_ref[...] = s_un                           # lane-dense (1, blk_n) store

    @pl.when(t < n_tiles)                       # phantom tiles: skip accumulation
    def _acc():                                 # lane-wise running sums (VPU only)
        sums_ref[0, 0:1, :] += s_un
        sums_ref[0, 1:2, :] += s_un * o_ref[...]
        sums_ref[0, 2:3, :] += s_un * c_ref[...]


def _ctpm_branch(d, o_row, c_row, i_row, w1, wb, b2, *, tile_n=512):
    """Runs one CTPM branch. Returns (s_normalized (n,), sum(s*o), sum(s*c))."""
    n, ddim = d.shape
    hp2 = w1.shape[0]
    hp = hp2 // 2

    blk_n = tile_n if n >= tile_n else n        # lane-tile width
    n_tiles = pl.cdiv(n, blk_n)                 # real tiles along N
    n_outer = 2 if n_tiles >= 2 else 1          # "parallel" chunks (v7x: 2 TCs)
    n_inner = pl.cdiv(n_tiles, n_outer)         # "arbitrary" reduction axis

    def tile_idx(go, gi):                       # clamp phantom tiles in range
        return jnp.minimum(go * n_inner + gi, n_tiles - 1)

    kernel = functools.partial(
        _ctpm_branch_kernel, hp=hp, n_rows=n, blk_n=blk_n,
        n_inner=n_inner, n_tiles=n_tiles)

    in_specs = [
        pl.BlockSpec((blk_n, ddim), lambda go, gi: (tile_idx(go, gi), 0)),
        pl.BlockSpec((1, blk_n), lambda go, gi: (0, tile_idx(go, gi))),
        pl.BlockSpec((1, blk_n), lambda go, gi: (0, tile_idx(go, gi))),
        pl.BlockSpec((1, blk_n), lambda go, gi: (0, tile_idx(go, gi))),
        pl.BlockSpec((hp2, ddim), lambda go, gi: (0, 0)),
        pl.BlockSpec((hp2, 2), lambda go, gi: (0, 0)),
        pl.BlockSpec((2, 1), lambda go, gi: (0, 0)),
    ]
    out_specs = (
        pl.BlockSpec((1, blk_n), lambda go, gi: (0, tile_idx(go, gi))),
        pl.BlockSpec((1, 8, blk_n), lambda go, gi: (go, 0, 0)),
    )

    # Resident VMEM estimate (double-buffered tiles + lane-padded weights).
    resident = 4 * (2 * blk_n * (ddim + 5) + 2 * 8 * blk_n
                    + hp2 * ddim + hp2 * 128 + 8 * 128)
    vmem_limit = int(min(64 * 1024 * 1024, max(8 * resident, 16 * 1024 * 1024)))

    cost = pl.CostEstimate(
        flops=2 * hp2 * ddim * n + 12 * n,
        transcendentals=(hp2 + 3) * n,
        bytes_accessed=4 * (n * ddim + 5 * n + n_outer * 8 * blk_n
                            + hp2 * (ddim + 2) + 2),
    )

    s_un, psums = pl.pallas_call(
        kernel,
        out_shape=(
            jax.ShapeDtypeStruct((1, n), jnp.float32),
            jax.ShapeDtypeStruct((n_outer, 8, blk_n), jnp.float32),
        ),
        grid=(n_outer, n_inner),
        in_specs=in_specs,
        out_specs=out_specs,
        compiler_params=pltpu.CompilerParams(
            dimension_semantics=("parallel", "arbitrary"),
            vmem_limit_bytes=vmem_limit),
        cost_estimate=cost,
    )(d, o_row, c_row, i_row, w1, wb, b2)

    tot = jnp.sum(psums[:, 0:3, :], axis=(0, 2))   # [sum s_un, sum s_un*o, sum s_un*c]
    denom = tot[0] + 1e-17                         # reference: s / (s.sum() + 1e-17)
    s = s_un[0] / denom
    return s, tot[1] / denom, tot[2] / denom


def ctpm_forward(params, D_tre, D_unt, o_tre, o_unt, c_tre, c_unt, i_tre, i_unt,
                 *, tile_n=512):
    """CTPM forward.  Returns (obj, cost_diff, order_diff, s_tre, s_unt)."""
    row = lambda x: jnp.reshape(x, (1, -1)).astype(jnp.float32)
    w1 = params["w1"].astype(jnp.float32)
    wb = params["wb"].astype(jnp.float32)
    b2 = params["b2"].astype(jnp.float32)

    s_tre, do_tre, dc_tre = _ctpm_branch(
        D_tre.astype(jnp.float32), row(o_tre), row(c_tre), row(i_tre),
        w1, wb, b2, tile_n=tile_n)
    s_unt, do_unt, dc_unt = _ctpm_branch(
        D_unt.astype(jnp.float32), row(o_unt), row(c_unt), row(i_unt),
        w1, wb, b2, tile_n=tile_n)

    cost_diff = dc_tre - dc_unt
    order_diff = do_tre - do_unt
    obj = order_diff / (cost_diff + 1e-9)
    return obj, cost_diff, order_diff, s_tre, s_unt


def _round_up(x, m):
    return (x + m - 1) // m * m


def init_params(key, D_dim, num_hidden):
    """nn.Linear-style uniform init, packed with the hidden dim padded to 8."""
    ks = jax.random.split(key, 8)
    s1 = 1.0 / float(D_dim) ** 0.5
    s2 = 1.0 / float(num_hidden) ** 0.5
    u = lambda k, shape, s: jax.random.uniform(k, shape, jnp.float32, -s, s)

    W_m = u(ks[0], (num_hidden, D_dim), s1)   # hidden_match.weight
    b_m = u(ks[1], (num_hidden,), s1)         # hidden_match.bias
    W_p = u(ks[2], (num_hidden, D_dim), s1)   # hidden_policy.weight
    b_p = u(ks[3], (num_hidden,), s1)         # hidden_policy.bias
    v_m = u(ks[4], (num_hidden,), s2)         # match_score.weight
    bm = u(ks[5], (1,), s2)                   # match_score.bias
    v_p = u(ks[6], (num_hidden,), s2)         # policy_score.weight
    bp = u(ks[7], (1,), s2)                   # policy_score.bias

    hp = max(8, _round_up(num_hidden, 8))     # sublane-align the hidden dim
    pad = hp - num_hidden

    def pad_rows(w):
        return jnp.concatenate([w, jnp.zeros((pad, D_dim), jnp.float32)], 0) if pad else w

    def pad_vec(v):
        return jnp.concatenate([v, jnp.zeros((pad,), jnp.float32)]) if pad else v

    w1 = jnp.concatenate([pad_rows(W_m), pad_rows(W_p)], axis=0)   # (2hp, D)
    b1 = jnp.concatenate([pad_vec(b_m), pad_vec(b_p)], axis=0)     # (2hp,)
    w2 = jnp.concatenate([pad_vec(v_m), pad_vec(v_p)], axis=0)     # (2hp,)  zero on pad rows
    wb = jnp.stack([b1, w2], axis=1)                               # (2hp, 2)
    b2 = jnp.concatenate([bm, bp]).reshape(2, 1)                   # (2, 1)
    return {"w1": w1, "wb": wb, "b2": b2}


def _reference_forward(params, D_tre, D_unt, o_tre, o_unt, c_tre, c_unt,
                       i_tre, i_unt):
    """Pure-JAX reference mirroring the PyTorch module (eval mode)."""
    w1, wb, b2 = params["w1"], params["wb"], params["b2"]
    hp = w1.shape[0] // 2
    b1, w2 = wb[:, 0], wb[:, 1]
    hi = jax.lax.Precision.HIGHEST

    def branch(D, o, c, i):
        h = jnp.tanh(jnp.dot(D.astype(jnp.float32), w1.T, precision=hi) + b1)
        s = jax.nn.sigmoid(jnp.dot(h[:, :hp], w2[:hp], precision=hi) + b2[0, 0])
        p = jax.nn.sigmoid(jnp.dot(h[:, hp:], w2[hp:], precision=hi) + b2[1, 0])
        sd = jax.nn.sigmoid(i.reshape(-1) - p)
        lh = sd * (1.0 - sd)
        s = s * lh
        s = s / (jnp.sum(s) + 1e-17)
        return s, jnp.sum(s * o.reshape(-1)), jnp.sum(s * c.reshape(-1))

    s_t, do_t, dc_t = branch(D_tre, o_tre, c_tre, i_tre)
    s_u, do_u, dc_u = branch(D_unt, o_unt, c_unt, i_unt)
    cost_diff = dc_t - dc_u
    order_diff = do_t - do_u
    return order_diff / (cost_diff + 1e-9), cost_diff, order_diff, s_t, s_u


if __name__ == "__main__":
    D_dim = 32
    num_hidden = 20        # exercises sublane padding (-> 24 rows per head)
    N_tre = 1024           # 4 tiles of 256 -> (2 outer x 2 inner) grid
    N_unt = 512            # 2 tiles of 256 -> (2 outer x 1 inner) grid
    tile_n = 256

    key = jax.random.PRNGKey(0)
    (k_param, k_dt, k_du, k_ot, k_ou,
     k_ct, k_cu, k_it, k_iu) = jax.random.split(key, 9)

    params = init_params(k_param, D_dim, num_hidden)

    D_tre = jax.random.normal(k_dt, (N_tre, D_dim), jnp.float32)
    D_unt = jax.random.normal(k_du, (N_unt, D_dim), jnp.float32)
    o_tre = jax.random.uniform(k_ot, (N_tre, 1), jnp.float32)
    o_unt = jax.random.uniform(k_ou, (N_unt, 1), jnp.float32)
    c_tre = jax.random.uniform(k_ct, (N_tre, 1), jnp.float32) + 0.5
    c_unt = jax.random.uniform(k_cu, (N_unt, 1), jnp.float32) + 0.5
    i_tre = jax.random.uniform(k_it, (N_tre, 1), jnp.float32)
    i_unt = jax.random.uniform(k_iu, (N_unt, 1), jnp.float32)

    fwd = jax.jit(functools.partial(ctpm_forward, tile_n=tile_n))
    out = fwd(params, D_tre, D_unt, o_tre, o_unt, c_tre, c_unt, i_tre, i_unt)
    jax.block_until_ready(out)
    obj, cost_diff, order_diff, s_tre, s_unt = out

    # Pure-JAX reference check (loose tolerance: kernel vs XLA matmul precision).
    r_obj, r_cd, r_od, r_st, r_su = _reference_forward(
        params, D_tre, D_unt, o_tre, o_unt, c_tre, c_unt, i_tre, i_unt)

    assert s_tre.shape == (N_tre,) and s_unt.shape == (N_unt,)
    assert bool(jnp.all(jnp.isfinite(s_tre))) and bool(jnp.all(jnp.isfinite(s_unt)))
    assert bool(jnp.isfinite(obj)) and bool(jnp.isfinite(cost_diff))
    assert bool(jnp.allclose(s_tre, r_st, rtol=5e-2, atol=1e-5))
    assert bool(jnp.allclose(s_unt, r_su, rtol=5e-2, atol=1e-5))
    assert bool(jnp.allclose(cost_diff, r_cd, rtol=5e-2, atol=2e-2))
    assert bool(jnp.allclose(order_diff, r_od, rtol=5e-2, atol=2e-2))
    print("KERNEL_OK")
</pallas_src>

<mosaic_0001>
module attributes {stable_mosaic.version = 11 : i64} {
  func.func @_ctpm_branch_kernel(%arg0: i32, %arg1: i32, %arg2: memref<256x32xf32, #tpu.memory_space<vmem>>, %arg3: memref<1x256xf32, #tpu.memory_space<vmem>>, %arg4: memref<1x256xf32, #tpu.memory_space<vmem>>, %arg5: memref<1x256xf32, #tpu.memory_space<vmem>>, %arg6: memref<48x32xf32, #tpu.memory_space<vmem>>, %arg7: memref<48x2xf32, #tpu.memory_space<vmem>>, %arg8: memref<2x1xf32, #tpu.memory_space<vmem>>, %arg9: memref<1x256xf32, #tpu.memory_space<vmem>>, %arg10: memref<1x8x256xf32, #tpu.memory_space<vmem>>) attributes {dimension_semantics = [#tpu.dimension_semantics<parallel>, #tpu.dimension_semantics<arbitrary>], iteration_bounds = array<i64: 2, 2>, scalar_prefetch = 0 : i64, scratch_operands = 0 : i64, tpu.core_type = #tpu.core_type<tc>, window_params = [{transform_indices = @transform_0, window_bounds = array<i64: 256, 32>}, {transform_indices = @transform_1, window_bounds = array<i64: 1, 256>}, {transform_indices = @transform_2, window_bounds = array<i64: 1, 256>}, {transform_indices = @transform_3, window_bounds = array<i64: 1, 256>}, {pipeline_mode = #tpu.pipeline_mode<synchronous>, transform_indices = @transform_4, window_bounds = array<i64: 48, 32>}, {pipeline_mode = #tpu.pipeline_mode<synchronous>, transform_indices = @transform_5, window_bounds = array<i64: 48, 2>}, {pipeline_mode = #tpu.pipeline_mode<synchronous>, transform_indices = @transform_6, window_bounds = array<i64: 2, 1>}, {transform_indices = @transform_7, window_bounds = array<i64: 1, 256>}, {transform_indices = @transform_8, window_bounds = array<i64: 1, 8, 256>}]} {
    %c2_i32 = arith.constant 2 : i32
    %0 = arith.muli %arg0, %c2_i32 : i32
    %1 = arith.addi %0, %arg1 : i32
    %c3_i32 = arith.constant 3 : i32
    %2 = arith.minsi %1, %c3_i32 : i32
    %c256_i32 = arith.constant 256 : i32
    %3 = arith.muli %2, %c256_i32 : i32
    %c0_i32 = arith.constant 0 : i32
    %4 = arith.cmpi eq, %arg1, %c0_i32 : i32
    %5 = arith.extui %4 : i1 to i32
    %c0_i32_0 = arith.constant 0 : i32
    %6 = arith.cmpi ne, %5, %c0_i32_0 : i32
    scf.if %6 {
      %cst_23 = arith.constant 0.000000e+00 : f32
      %61 = vector.broadcast %cst_23 : f32 to vector<1x8x256xf32>
      %c0_24 = arith.constant 0 : index
      %c0_25 = arith.constant 0 : index
      %c0_26 = arith.constant 0 : index
      %62 = vector.load %arg10[%c0_24, %c0_25, %c0_26] : memref<1x8x256xf32, #tpu.memory_space<vmem>>, vector<1x8x256xf32>
      tpu.vector_store %arg10[%c0_24, %c0_25, %c0_26], %61 {strides = array<i32>} : memref<1x8x256xf32, #tpu.memory_space<vmem>>, vector<1x8x256xf32>,
    } else {
    }
    %c0 = arith.constant 0 : index
    %c0_1 = arith.constant 0 : index
    %7 = vector.load %arg6[%c0, %c0_1] : memref<48x32xf32, #tpu.memory_space<vmem>>, vector<48x32xf32>
    %c0_2 = arith.constant 0 : index
    %c0_3 = arith.constant 0 : index
    %8 = vector.load %arg7[%c0_2, %c0_3] : memref<48x2xf32, #tpu.memory_space<vmem>>, vector<48x1xf32>
    %c0_4 = arith.constant 0 : index
    %c1 = arith.constant 1 : index
    %9 = vector.load %arg7[%c0_4, %c1] : memref<48x2xf32, #tpu.memory_space<vmem>>, vector<48x1xf32>
    %c0_5 = arith.constant 0 : index
    %c0_6 = arith.constant 0 : index
    %10 = vector.load %arg8[%c0_5, %c0_6] : memref<2x1xf32, #tpu.memory_space<vmem>>, vector<1x1xf32>
    %c1_7 = arith.constant 1 : index
    %c0_8 = arith.constant 0 : index
    %11 = vector.load %arg8[%c1_7, %c0_8] : memref<2x1xf32, #tpu.memory_space<vmem>>, vector<1x1xf32>
    %c0_9 = arith.constant 0 : index
    %c0_10 = arith.constant 0 : index
    %12 = vector.load %arg2[%c0_9, %c0_10] : memref<256x32xf32, #tpu.memory_space<vmem>>, vector<256x32xf32>
    %cst = arith.constant dense<0.000000e+00> : vector<48x256xf32>
    %13 = tpu.matmul %7, %12, %cst {dimension_numbers = #tpu.dot_dimension_numbers<[1], [1], [0], [0], [0, 0, 1, 0], [], []>} : vector<48x32xf32>, vector<256x32xf32>, vector<48x256xf32> -> vector<48x256xf32>
    %14 = vector.broadcast %8 : vector<48x1xf32> to vector<48x256xf32>
    %15 = arith.addf %13, %14 : vector<48x256xf32>
    %16 = math.tanh %15 : vector<48x256xf32>
    %17 = vector.broadcast %9 : vector<48x1xf32> to vector<48x256xf32>
    %18 = arith.mulf %16, %17 : vector<48x256xf32>
    %19 = vector.extract_strided_slice %18 {offsets = [0, 0], sizes = [24, 256], strides = [1, 1]} : vector<48x256xf32> to vector<24x256xf32>
    %cst_11 = arith.constant dense<0.000000e+00> : vector<256xf32>
    %20 = vector.multi_reduction <add>, %19, %cst_11 [0] : vector<24x256xf32> to vector<256xf32>
    %21 = vector.shape_cast %20 : vector<256xf32> to vector<1x256xf32>
    %22 = vector.broadcast %10 : vector<1x1xf32> to vector<1x256xf32>
    %23 = arith.addf %21, %22 : vector<1x256xf32>
    %24 = vector.extract_strided_slice %18 {offsets = [24, 0], sizes = [24, 256], strides = [1, 1]} : vector<48x256xf32> to vector<24x256xf32>
    %cst_12 = arith.constant dense<0.000000e+00> : vector<256xf32>
    %25 = vector.multi_reduction <add>, %24, %cst_12 [0] : vector<24x256xf32> to vector<256xf32>
    %26 = vector.shape_cast %25 : vector<256xf32> to vector<1x256xf32>
    %27 = vector.broadcast %11 : vector<1x1xf32> to vector<1x256xf32>
    %28 = arith.addf %26, %27 : vector<1x256xf32>
    %29 = arith.negf %23 : vector<1x256xf32>
    %30 = math.exp %29 : vector<1x256xf32>
    %cst_13 = arith.constant 1.000000e+00 : f32
    %31 = vector.broadcast %cst_13 : f32 to vector<1x256xf32>
    %32 = arith.addf %31, %30 : vector<1x256xf32>
    %33 = arith.divf %31, %32 : vector<1x256xf32>
    %34 = arith.negf %28 : vector<1x256xf32>
    %35 = math.exp %34 : vector<1x256xf32>
    %cst_14 = arith.constant 1.000000e+00 : f32
    %36 = vector.broadcast %cst_14 : f32 to vector<1x256xf32>
    %37 = arith.addf %36, %35 : vector<1x256xf32>
    %38 = arith.divf %36, %37 : vector<1x256xf32>
    %c0_15 = arith.constant 0 : index
    %c0_16 = arith.constant 0 : index
    %39 = vector.load %arg5[%c0_15, %c0_16] : memref<1x256xf32, #tpu.memory_space<vmem>>, vector<1x256xf32>
    %40 = arith.subf %39, %38 : vector<1x256xf32>
    %41 = arith.negf %40 : vector<1x256xf32>
    %42 = math.exp %41 : vector<1x256xf32>
    %cst_17 = arith.constant 1.000000e+00 : f32
    %43 = vector.broadcast %cst_17 : f32 to vector<1x256xf32>
    %44 = arith.addf %43, %42 : vector<1x256xf32>
    %45 = arith.divf %43, %44 : vector<1x256xf32>
    %cst_18 = arith.constant 1.000000e+00 : f32
    %46 = vector.broadcast %cst_18 : f32 to vector<1x256xf32>
    %47 = arith.subf %46, %45 : vector<1x256xf32>
    %48 = arith.mulf %45, %47 : vector<1x256xf32>
    %49 = arith.mulf %33, %48 : vector<1x256xf32>
    %50 = tpu.iota {dimensions = array<i32: 1>} : vector<1x256xi32>
    %51 = vector.broadcast %3 : i32 to vector<1x256xi32>
    %52 = arith.addi %51, %50 : vector<1x256xi32>
    %c1024_i32 = arith.constant 1024 : i32
    %53 = vector.broadcast %c1024_i32 : i32 to vector<1x256xi32>
    %54 = arith.cmpi slt, %52, %53 : vector<1x256xi32>
    %cst_19 = arith.constant 0.000000e+00 : f32
    %55 = vector.broadcast %cst_19 : f32 to vector<1x256xf32>
    %56 = arith.select %54, %49, %55 : vector<1x256xi1>, vector<1x256xf32>
    %c0_20 = arith.constant 0 : index
    %c0_21 = arith.constant 0 : index
    %57 = vector.load %arg9[%c0_20, %c0_21] : memref<1x256xf32, #tpu.memory_space<vmem>>, vector<1x256xf32>
    tpu.vector_store %arg9[%c0_20, %c0_21], %56 {strides = array<i32>} : memref<1x256xf32, #tpu.memory_space<vmem>>, vector<1x256xf32>,
    %c4_i32 = arith.constant 4 : i32
    %58 = arith.cmpi slt, %1, %c4_i32 : i32
    %59 = arith.extui %58 : i1 to i32
    %c0_i32_22 = arith.constant 0 : i32
    %60 = arith.cmpi ne, %59, %c0_i32_22 : i32
    scf.if %60 {
      %c0_23 = arith.constant 0 : index
      %c0_24 = arith.constant 0 : index
      %c0_25 = arith.constant 0 : index
      %61 = vector.load %arg10[%c0_23, %c0_24, %c0_25] : memref<1x8x256xf32, #tpu.memory_space<vmem>>, vector<1x1x256xf32>
      %62 = vector.shape_cast %61 : vector<1x1x256xf32> to vector<1x256xf32>
      %63 = arith.addf %62, %56 : vector<1x256xf32>
      %c0_26 = arith.constant 0 : index
      %c0_27 = arith.constant 0 : index
      %c0_28 = arith.constant 0 : index
      %64 = vector.load %arg10[%c0_26, %c0_27, %c0_28] : memref<1x8x256xf32, #tpu.memory_space<vmem>>, vector<1x1x256xf32>
      %65 = vector.shape_cast %64 : vector<1x1x256xf32> to vector<1x256xf32>
      %66 = vector.shape_cast %63 : vector<1x256xf32> to vector<1x1x256xf32>
      tpu.vector_store %arg10[%c0_26, %c0_27, %c0_28], %66 {strides = array<i32>} : memref<1x8x256xf32, #tpu.memory_space<vmem>>, vector<1x1x256xf32>,
      %c0_29 = arith.constant 0 : index
      %c1_30 = arith.constant 1 : index
      %c0_31 = arith.constant 0 : index
      %67 = vector.load %arg10[%c0_29, %c1_30, %c0_31] : memref<1x8x256xf32, #tpu.memory_space<vmem>>, vector<1x1x256xf32>
      %68 = vector.shape_cast %67 : vector<1x1x256xf32> to vector<1x256xf32>
      %c0_32 = arith.constant 0 : index
      %c0_33 = arith.constant 0 : index
      %69 = vector.load %arg3[%c0_32, %c0_33] : memref<1x256xf32, #tpu.memory_space<vmem>>, vector<1x256xf32>
      %70 = arith.mulf %56, %69 : vector<1x256xf32>
      %71 = arith.addf %68, %70 : vector<1x256xf32>
      %c0_34 = arith.constant 0 : index
      %c1_35 = arith.constant 1 : index
      %c0_36 = arith.constant 0 : index
      %72 = vector.load %arg10[%c0_34, %c1_35, %c0_36] : memref<1x8x256xf32, #tpu.memory_space<vmem>>, vector<1x1x256xf32>
      %73 = vector.shape_cast %72 : vector<1x1x256xf32> to vector<1x256xf32>
      %74 = vector.shape_cast %71 : vector<1x256xf32> to vector<1x1x256xf32>
      tpu.vector_store %arg10[%c0_34, %c1_35, %c0_36], %74 {strides = array<i32>} : memref<1x8x256xf32, #tpu.memory_space<vmem>>, vector<1x1x256xf32>,
      %c0_37 = arith.constant 0 : index
      %c2 = arith.constant 2 : index
      %c0_38 = arith.constant 0 : index
      %75 = vector.load %arg10[%c0_37, %c2, %c0_38] : memref<1x8x256xf32, #tpu.memory_space<vmem>>, vector<1x1x256xf32>
      %76 = vector.shape_cast %75 : vector<1x1x256xf32> to vector<1x256xf32>
      %c0_39 = arith.constant 0 : index
      %c0_40 = arith.constant 0 : index
      %77 = vector.load %arg4[%c0_39, %c0_40] : memref<1x256xf32, #tpu.memory_space<vmem>>, vector<1x256xf32>
      %78 = arith.mulf %56, %77 : vector<1x256xf32>
      %79 = arith.addf %76, %78 : vector<1x256xf32>
      %c0_41 = arith.constant 0 : index
      %c2_42 = arith.constant 2 : index
      %c0_43 = arith.constant 0 : index
      %80 = vector.load %arg10[%c0_41, %c2_42, %c0_43] : memref<1x8x256xf32, #tpu.memory_space<vmem>>, vector<1x1x256xf32>
      %81 = vector.shape_cast %80 : vector<1x1x256xf32> to vector<1x256xf32>
      %82 = vector.shape_cast %79 : vector<1x256xf32> to vector<1x1x256xf32>
      tpu.vector_store %arg10[%c0_41, %c2_42, %c0_43], %82 {strides = array<i32>} : memref<1x8x256xf32, #tpu.memory_space<vmem>>, vector<1x1x256xf32>,
    } else {
    }
    return
  }
  func.func @transform_0(%arg0: i32, %arg1: i32) -> (i32, i32) {
    %c2_i32 = arith.constant 2 : i32
    %0 = arith.muli %arg0, %c2_i32 : i32
    %1 = arith.addi %0, %arg1 : i32
    %c3_i32 = arith.constant 3 : i32
    %2 = arith.minsi %1, %c3_i32 : i32
    %c0_i32 = arith.constant 0 : i32
    %c0_i32_0 = arith.constant 0 : i32
    return %2, %c0_i32 : i32, i32
  }
  func.func @transform_1(%arg0: i32, %arg1: i32) -> (i32, i32) {
    %c2_i32 = arith.constant 2 : i32
    %0 = arith.muli %arg0, %c2_i32 : i32
    %1 = arith.addi %0, %arg1 : i32
    %c3_i32 = arith.constant 3 : i32
    %2 = arith.minsi %1, %c3_i32 : i32
    %c0_i32 = arith.constant 0 : i32
    %c0_i32_0 = arith.constant 0 : i32
    return %c0_i32, %2 : i32, i32
  }
  func.func @transform_2(%arg0: i32, %arg1: i32) -> (i32, i32) {
    %c2_i32 = arith.constant 2 : i32
    %0 = arith.muli %arg0, %c2_i32 : i32
    %1 = arith.addi %0, %arg1 : i32
    %c3_i32 = arith.constant 3 : i32
    %2 = arith.minsi %1, %c3_i32 : i32
    %c0_i32 = arith.constant 0 : i32
    %c0_i32_0 = arith.constant 0 : i32
    return %c0_i32, %2 : i32, i32
  }
  func.func @transform_3(%arg0: i32, %arg1: i32) -> (i32, i32) {
    %c2_i32 = arith.constant 2 : i32
    %0 = arith.muli %arg0, %c2_i32 : i32
    %1 = arith.addi %0, %arg1 : i32
    %c3_i32 = arith.constant 3 : i32
    %2 = arith.minsi %1, %c3_i32 : i32
    %c0_i32 = arith.constant 0 : i32
    %c0_i32_0 = arith.constant 0 : i32
    return %c0_i32, %2 : i32, i32
  }
  func.func @transform_4(%arg0: i32, %arg1: i32) -> (i32, i32) {
    %c0_i32 = arith.constant 0 : i32
    %c0_i32_0 = arith.constant 0 : i32
    %c0_i32_1 = arith.constant 0 : i32
    return %c0_i32, %c0_i32_0 : i32, i32
  }
  func.func @transform_5(%arg0: i32, %arg1: i32) -> (i32, i32) {
    %c0_i32 = arith.constant 0 : i32
    %c0_i32_0 = arith.constant 0 : i32
    %c0_i32_1 = arith.constant 0 : i32
    return %c0_i32, %c0_i32_0 : i32, i32
  }
  func.func @transform_6(%arg0: i32, %arg1: i32) -> (i32, i32) {
    %c0_i32 = arith.constant 0 : i32
    %c0_i32_0 = arith.constant 0 : i32
    %c0_i32_1 = arith.constant 0 : i32
    return %c0_i32, %c0_i32_0 : i32, i32
  }
  func.func @transform_7(%arg0: i32, %arg1: i32) -> (i32, i32) {
    %c2_i32 = arith.constant 2 : i32
    %0 = arith.muli %arg0, %c2_i32 : i32
    %1 = arith.addi %0, %arg1 : i32
    %c3_i32 = arith.constant 3 : i32
    %2 = arith.minsi %1, %c3_i32 : i32
    %c0_i32 = arith.constant 0 : i32
    %c0_i32_0 = arith.constant 0 : i32
    return %c0_i32, %2 : i32, i32
  }
  func.func @transform_8(%arg0: i32, %arg1: i32) -> (i32, i32, i32) {
    %c0_i32 = arith.constant 0 : i32
    %c0_i32_0 = arith.constant 0 : i32
    %c0_i32_1 = arith.constant 0 : i32
    return %arg0, %c0_i32, %c0_i32_0 : i32, i32, i32
  }
}

module attributes {stable_mosaic.version = 11 : i64} {
  func.func @_ctpm_branch_kernel(%arg0: i32, %arg1: i32, %arg2: memref<256x32xf32, #tpu.memory_space<vmem>>, %arg3: memref<1x256xf32, #tpu.memory_space<vmem>>, %arg4: memref<1x256xf32, #tpu.memory_space<vmem>>, %arg5: memref<1x256xf32, #tpu.memory_space<vmem>>, %arg6: memref<48x32xf32, #tpu.memory_space<vmem>>, %arg7: memref<48x2xf32, #tpu.memory_space<vmem>>, %arg8: memref<2x1xf32, #tpu.memory_space<vmem>>, %arg9: memref<1x256xf32, #tpu.memory_space<vmem>>, %arg10: memref<1x8x256xf32, #tpu.memory_space<vmem>>) attributes {dimension_semantics = [#tpu.dimension_semantics<parallel>, #tpu.dimension_semantics<arbitrary>], iteration_bounds = array<i64: 2, 1>, scalar_prefetch = 0 : i64, scratch_operands = 0 : i64, tpu.core_type = #tpu.core_type<tc>, window_params = [{transform_indices = @transform_0, window_bounds = array<i64: 256, 32>}, {transform_indices = @transform_1, window_bounds = array<i64: 1, 256>}, {transform_indices = @transform_2, window_bounds = array<i64: 1, 256>}, {transform_indices = @transform_3, window_bounds = array<i64: 1, 256>}, {pipeline_mode = #tpu.pipeline_mode<synchronous>, transform_indices = @transform_4, window_bounds = array<i64: 48, 32>}, {pipeline_mode = #tpu.pipeline_mode<synchronous>, transform_indices = @transform_5, window_bounds = array<i64: 48, 2>}, {pipeline_mode = #tpu.pipeline_mode<synchronous>, transform_indices = @transform_6, window_bounds = array<i64: 2, 1>}, {transform_indices = @transform_7, window_bounds = array<i64: 1, 256>}, {transform_indices = @transform_8, window_bounds = array<i64: 1, 8, 256>}]} {
    %c1_i32 = arith.constant 1 : i32
    %0 = arith.muli %arg0, %c1_i32 : i32
    %1 = arith.addi %0, %arg1 : i32
    %c1_i32_0 = arith.constant 1 : i32
    %2 = arith.minsi %1, %c1_i32_0 : i32
    %c256_i32 = arith.constant 256 : i32
    %3 = arith.muli %2, %c256_i32 : i32
    %c0_i32 = arith.constant 0 : i32
    %4 = arith.cmpi eq, %arg1, %c0_i32 : i32
    %5 = arith.extui %4 : i1 to i32
    %c0_i32_1 = arith.constant 0 : i32
    %6 = arith.cmpi ne, %5, %c0_i32_1 : i32
    scf.if %6 {
      %cst_24 = arith.constant 0.000000e+00 : f32
      %61 = vector.broadcast %cst_24 : f32 to vector<1x8x256xf32>
      %c0_25 = arith.constant 0 : index
      %c0_26 = arith.constant 0 : index
      %c0_27 = arith.constant 0 : index
      %62 = vector.load %arg10[%c0_25, %c0_26, %c0_27] : memref<1x8x256xf32, #tpu.memory_space<vmem>>, vector<1x8x256xf32>
      tpu.vector_store %arg10[%c0_25, %c0_26, %c0_27], %61 {strides = array<i32>} : memref<1x8x256xf32, #tpu.memory_space<vmem>>, vector<1x8x256xf32>,
    } else {
    }
    %c0 = arith.constant 0 : index
    %c0_2 = arith.constant 0 : index
    %7 = vector.load %arg6[%c0, %c0_2] : memref<48x32xf32, #tpu.memory_space<vmem>>, vector<48x32xf32>
    %c0_3 = arith.constant 0 : index
    %c0_4 = arith.constant 0 : index
    %8 = vector.load %arg7[%c0_3, %c0_4] : memref<48x2xf32, #tpu.memory_space<vmem>>, vector<48x1xf32>
    %c0_5 = arith.constant 0 : index
    %c1 = arith.constant 1 : index
    %9 = vector.load %arg7[%c0_5, %c1] : memref<48x2xf32, #tpu.memory_space<vmem>>, vector<48x1xf32>
    %c0_6 = arith.constant 0 : index
    %c0_7 = arith.constant 0 : index
    %10 = vector.load %arg8[%c0_6, %c0_7] : memref<2x1xf32, #tpu.memory_space<vmem>>, vector<1x1xf32>
    %c1_8 = arith.constant 1 : index
    %c0_9 = arith.constant 0 : index
    %11 = vector.load %arg8[%c1_8, %c0_9] : memref<2x1xf32, #tpu.memory_space<vmem>>, vector<1x1xf32>
    %c0_10 = arith.constant 0 : index
    %c0_11 = arith.constant 0 : index
    %12 = vector.load %arg2[%c0_10, %c0_11] : memref<256x32xf32, #tpu.memory_space<vmem>>, vector<256x32xf32>
    %cst = arith.constant dense<0.000000e+00> : vector<48x256xf32>
    %13 = tpu.matmul %7, %12, %cst {dimension_numbers = #tpu.dot_dimension_numbers<[1], [1], [0], [0], [0, 0, 1, 0], [], []>} : vector<48x32xf32>, vector<256x32xf32>, vector<48x256xf32> -> vector<48x256xf32>
    %14 = vector.broadcast %8 : vector<48x1xf32> to vector<48x256xf32>
    %15 = arith.addf %13, %14 : vector<48x256xf32>
    %16 = math.tanh %15 : vector<48x256xf32>
    %17 = vector.broadcast %9 : vector<48x1xf32> to vector<48x256xf32>
    %18 = arith.mulf %16, %17 : vector<48x256xf32>
    %19 = vector.extract_strided_slice %18 {offsets = [0, 0], sizes = [24, 256], strides = [1, 1]} : vector<48x256xf32> to vector<24x256xf32>
    %cst_12 = arith.constant dense<0.000000e+00> : vector<256xf32>
    %20 = vector.multi_reduction <add>, %19, %cst_12 [0] : vector<24x256xf32> to vector<256xf32>
    %21 = vector.shape_cast %20 : vector<256xf32> to vector<1x256xf32>
    %22 = vector.broadcast %10 : vector<1x1xf32> to vector<1x256xf32>
    %23 = arith.addf %21, %22 : vector<1x256xf32>
    %24 = vector.extract_strided_slice %18 {offsets = [24, 0], sizes = [24, 256], strides = [1, 1]} : vector<48x256xf32> to vector<24x256xf32>
    %cst_13 = arith.constant dense<0.000000e+00> : vector<256xf32>
    %25 = vector.multi_reduction <add>, %24, %cst_13 [0] : vector<24x256xf32> to vector<256xf32>
    %26 = vector.shape_cast %25 : vector<256xf32> to vector<1x256xf32>
    %27 = vector.broadcast %11 : vector<1x1xf32> to vector<1x256xf32>
    %28 = arith.addf %26, %27 : vector<1x256xf32>
    %29 = arith.negf %23 : vector<1x256xf32>
    %30 = math.exp %29 : vector<1x256xf32>
    %cst_14 = arith.constant 1.000000e+00 : f32
    %31 = vector.broadcast %cst_14 : f32 to vector<1x256xf32>
    %32 = arith.addf %31, %30 : vector<1x256xf32>
    %33 = arith.divf %31, %32 : vector<1x256xf32>
    %34 = arith.negf %28 : vector<1x256xf32>
    %35 = math.exp %34 : vector<1x256xf32>
    %cst_15 = arith.constant 1.000000e+00 : f32
    %36 = vector.broadcast %cst_15 : f32 to vector<1x256xf32>
    %37 = arith.addf %36, %35 : vector<1x256xf32>
    %38 = arith.divf %36, %37 : vector<1x256xf32>
    %c0_16 = arith.constant 0 : index
    %c0_17 = arith.constant 0 : index
    %39 = vector.load %arg5[%c0_16, %c0_17] : memref<1x256xf32, #tpu.memory_space<vmem>>, vector<1x256xf32>
    %40 = arith.subf %39, %38 : vector<1x256xf32>
    %41 = arith.negf %40 : vector<1x256xf32>
    %42 = math.exp %41 : vector<1x256xf32>
    %cst_18 = arith.constant 1.000000e+00 : f32
    %43 = vector.broadcast %cst_18 : f32 to vector<1x256xf32>
    %44 = arith.addf %43, %42 : vector<1x256xf32>
    %45 = arith.divf %43, %44 : vector<1x256xf32>
    %cst_19 = arith.constant 1.000000e+00 : f32
    %46 = vector.broadcast %cst_19 : f32 to vector<1x256xf32>
    %47 = arith.subf %46, %45 : vector<1x256xf32>
    %48 = arith.mulf %45, %47 : vector<1x256xf32>
    %49 = arith.mulf %33, %48 : vector<1x256xf32>
    %50 = tpu.iota {dimensions = array<i32: 1>} : vector<1x256xi32>
    %51 = vector.broadcast %3 : i32 to vector<1x256xi32>
    %52 = arith.addi %51, %50 : vector<1x256xi32>
    %c512_i32 = arith.constant 512 : i32
    %53 = vector.broadcast %c512_i32 : i32 to vector<1x256xi32>
    %54 = arith.cmpi slt, %52, %53 : vector<1x256xi32>
    %cst_20 = arith.constant 0.000000e+00 : f32
    %55 = vector.broadcast %cst_20 : f32 to vector<1x256xf32>
    %56 = arith.select %54, %49, %55 : vector<1x256xi1>, vector<1x256xf32>
    %c0_21 = arith.constant 0 : index
    %c0_22 = arith.constant 0 : index
    %57 = vector.load %arg9[%c0_21, %c0_22] : memref<1x256xf32, #tpu.memory_space<vmem>>, vector<1x256xf32>
    tpu.vector_store %arg9[%c0_21, %c0_22], %56 {strides = array<i32>} : memref<1x256xf32, #tpu.memory_space<vmem>>, vector<1x256xf32>,
    %c2_i32 = arith.constant 2 : i32
    %58 = arith.cmpi slt, %1, %c2_i32 : i32
    %59 = arith.extui %58 : i1 to i32
    %c0_i32_23 = arith.constant 0 : i32
    %60 = arith.cmpi ne, %59, %c0_i32_23 : i32
    scf.if %60 {
      %c0_24 = arith.constant 0 : index
      %c0_25 = arith.constant 0 : index
      %c0_26 = arith.constant 0 : index
      %61 = vector.load %arg10[%c0_24, %c0_25, %c0_26] : memref<1x8x256xf32, #tpu.memory_space<vmem>>, vector<1x1x256xf32>
      %62 = vector.shape_cast %61 : vector<1x1x256xf32> to vector<1x256xf32>
      %63 = arith.addf %62, %56 : vector<1x256xf32>
      %c0_27 = arith.constant 0 : index
      %c0_28 = arith.constant 0 : index
      %c0_29 = arith.constant 0 : index
      %64 = vector.load %arg10[%c0_27, %c0_28, %c0_29] : memref<1x8x256xf32, #tpu.memory_space<vmem>>, vector<1x1x256xf32>
      %65 = vector.shape_cast %64 : vector<1x1x256xf32> to vector<1x256xf32>
      %66 = vector.shape_cast %63 : vector<1x256xf32> to vector<1x1x256xf32>
      tpu.vector_store %arg10[%c0_27, %c0_28, %c0_29], %66 {strides = array<i32>} : memref<1x8x256xf32, #tpu.memory_space<vmem>>, vector<1x1x256xf32>,
      %c0_30 = arith.constant 0 : index
      %c1_31 = arith.constant 1 : index
      %c0_32 = arith.constant 0 : index
      %67 = vector.load %arg10[%c0_30, %c1_31, %c0_32] : memref<1x8x256xf32, #tpu.memory_space<vmem>>, vector<1x1x256xf32>
      %68 = vector.shape_cast %67 : vector<1x1x256xf32> to vector<1x256xf32>
      %c0_33 = arith.constant 0 : index
      %c0_34 = arith.constant 0 : index
      %69 = vector.load %arg3[%c0_33, %c0_34] : memref<1x256xf32, #tpu.memory_space<vmem>>, vector<1x256xf32>
      %70 = arith.mulf %56, %69 : vector<1x256xf32>
      %71 = arith.addf %68, %70 : vector<1x256xf32>
      %c0_35 = arith.constant 0 : index
      %c1_36 = arith.constant 1 : index
      %c0_37 = arith.constant 0 : index
      %72 = vector.load %arg10[%c0_35, %c1_36, %c0_37] : memref<1x8x256xf32, #tpu.memory_space<vmem>>, vector<1x1x256xf32>
      %73 = vector.shape_cast %72 : vector<1x1x256xf32> to vector<1x256xf32>
      %74 = vector.shape_cast %71 : vector<1x256xf32> to vector<1x1x256xf32>
      tpu.vector_store %arg10[%c0_35, %c1_36, %c0_37], %74 {strides = array<i32>} : memref<1x8x256xf32, #tpu.memory_space<vmem>>, vector<1x1x256xf32>,
      %c0_38 = arith.constant 0 : index
      %c2 = arith.constant 2 : index
      %c0_39 = arith.constant 0 : index
      %75 = vector.load %arg10[%c0_38, %c2, %c0_39] : memref<1x8x256xf32, #tpu.memory_space<vmem>>, vector<1x1x256xf32>
      %76 = vector.shape_cast %75 : vector<1x1x256xf32> to vector<1x256xf32>
      %c0_40 = arith.constant 0 : index
      %c0_41 = arith.constant 0 : index
      %77 = vector.load %arg4[%c0_40, %c0_41] : memref<1x256xf32, #tpu.memory_space<vmem>>, vector<1x256xf32>
      %78 = arith.mulf %56, %77 : vector<1x256xf32>
      %79 = arith.addf %76, %78 : vector<1x256xf32>
      %c0_42 = arith.constant 0 : index
      %c2_43 = arith.constant 2 : index
      %c0_44 = arith.constant 0 : index
      %80 = vector.load %arg10[%c0_42, %c2_43, %c0_44] : memref<1x8x256xf32, #tpu.memory_space<vmem>>, vector<1x1x256xf32>
      %81 = vector.shape_cast %80 : vector<1x1x256xf32> to vector<1x256xf32>
      %82 = vector.shape_cast %79 : vector<1x256xf32> to vector<1x1x256xf32>
      tpu.vector_store %arg10[%c0_42, %c2_43, %c0_44], %82 {strides = array<i32>} : memref<1x8x256xf32, #tpu.memory_space<vmem>>, vector<1x1x256xf32>,
    } else {
    }
    return
  }
  func.func @transform_0(%arg0: i32, %arg1: i32) -> (i32, i32) {
    %c1_i32 = arith.constant 1 : i32
    %0 = arith.muli %arg0, %c1_i32 : i32
    %1 = arith.addi %0, %arg1 : i32
    %c1_i32_0 = arith.constant 1 : i32
    %2 = arith.minsi %1, %c1_i32_0 : i32
    %c0_i32 = arith.constant 0 : i32
    %c0_i32_1 = arith.constant 0 : i32
    return %2, %c0_i32 : i32, i32
  }
  func.func @transform_1(%arg0: i32, %arg1: i32) -> (i32, i32) {
    %c1_i32 = arith.constant 1 : i32
    %0 = arith.muli %arg0, %c1_i32 : i32
    %1 = arith.addi %0, %arg1 : i32
    %c1_i32_0 = arith.constant 1 : i32
    %2 = arith.minsi %1, %c1_i32_0 : i32
    %c0_i32 = arith.constant 0 : i32
    %c0_i32_1 = arith.constant 0 : i32
    return %c0_i32, %2 : i32, i32
  }
  func.func @transform_2(%arg0: i32, %arg1: i32) -> (i32, i32) {
    %c1_i32 = arith.constant 1 : i32
    %0 = arith.muli %arg0, %c1_i32 : i32
    %1 = arith.addi %0, %arg1 : i32
    %c1_i32_0 = arith.constant 1 : i32
    %2 = arith.minsi %1, %c1_i32_0 : i32
    %c0_i32 = arith.constant 0 : i32
    %c0_i32_1 = arith.constant 0 : i32
    return %c0_i32, %2 : i32, i32
  }
  func.func @transform_3(%arg0: i32, %arg1: i32) -> (i32, i32) {
    %c1_i32 = arith.constant 1 : i32
    %0 = arith.muli %arg0, %c1_i32 : i32
    %1 = arith.addi %0, %arg1 : i32
    %c1_i32_0 = arith.constant 1 : i32
    %2 = arith.minsi %1, %c1_i32_0 : i32
    %c0_i32 = arith.constant 0 : i32
    %c0_i32_1 = arith.constant 0 : i32
    return %c0_i32, %2 : i32, i32
  }
  func.func @transform_4(%arg0: i32, %arg1: i32) -> (i32, i32) {
    %c0_i32 = arith.constant 0 : i32
    %c0_i32_0 = arith.constant 0 : i32
    %c0_i32_1 = arith.constant 0 : i32
    return %c0_i32, %c0_i32_0 : i32, i32
  }
  func.func @transform_5(%arg0: i32, %arg1: i32) -> (i32, i32) {
    %c0_i32 = arith.constant 0 : i32
    %c0_i32_0 = arith.constant 0 : i32
    %c0_i32_1 = arith.constant 0 : i32
    return %c0_i32, %c0_i32_0 : i32, i32
  }
  func.func @transform_6(%arg0: i32, %arg1: i32) -> (i32, i32) {
    %c0_i32 = arith.constant 0 : i32
    %c0_i32_0 = arith.constant 0 : i32
    %c0_i32_1 = arith.constant 0 : i32
    return %c0_i32, %c0_i32_0 : i32, i32
  }
  func.func @transform_7(%arg0: i32, %arg1: i32) -> (i32, i32) {
    %c1_i32 = arith.constant 1 : i32
    %0 = arith.muli %arg0, %c1_i32 : i32
    %1 = arith.addi %0, %arg1 : i32
    %c1_i32_0 = arith.constant 1 : i32
    %2 = arith.minsi %1, %c1_i32_0 : i32
    %c0_i32 = arith.constant 0 : i32
    %c0_i32_1 = arith.constant 0 : i32
    return %c0_i32, %2 : i32, i32
  }
  func.func @transform_8(%arg0: i32, %arg1: i32) -> (i32, i32, i32) {
    %c0_i32 = arith.constant 0 : i32
    %c0_i32_0 = arith.constant 0 : i32
    %c0_i32_1 = arith.constant 0 : i32
    return %arg0, %c0_i32, %c0_i32_0 : i32, i32, i32
  }
}

</mosaic_0001>

<bundles_post_ra>
// kernel: ctpm_forward.2
= control target key start
LH: loop header
LB: loop body
LE: loop exit
PB: predicated region body
PF: predicated region fallthrough
CT: control target
= control target key end

     0   :  { %s1503_s27 = smov 0   ;;  %s1505_s28 = smov 0   ;;  %s1813_s0 = inlined_call_operand.vmem [shape: f32[1024,32], index: 0, kind: input, shape index: {}]   ;;  %s1814_s1 = inlined_call_operand.vmem [shape: f32[1,1024], index: 1, kind: input, shape index: {}]   ;;  %s1815_s2 = inlined_call_operand.vmem [shape: f32[1,1024], index: 2, kind: input, shape index: {}]   ;;  %s1816_s3 = inlined_call_operand.vmem [shape: f32[1,1024], index: 3, kind: input, shape index: {}]   ;;  %s1817_s4 = inlined_call_operand.vmem [shape: f32[48,32], index: 4, kind: input, shape index: {}]   ;;  %s1818_s5 = inlined_call_operand.vmem [shape: f32[48,2], index: 5, kind: input, shape index: {}]   ;;  %s1819_s6 = inlined_call_operand.vmem [shape: f32[2,1], index: 6, kind: input, shape index: {}]   ;;  %s1820_s7 = inlined_call_operand.vmem [shape: f32[1,1024], index: 7, kind: output, shape index: {0}]   ;;  %s1821_s8 = inlined_call_operand.vmem [shape: f32[2,8,256], index: 8, kind: output, shape index: {1}]  }
   0x1   :  { %1823 = sst [smem:[#allocation5_spill]] %s1821_s8  ;;  %s1507_s29 = smov 0  }
   0x2   :  { %s1509_s30 = smov 0   ;;  %s1511_s9 = smov 0  }
   0x3 LB: > { %1824 = sst [smem:[#allocation2_spill]] %s1449_s30  ;;  %s28_s10 = sadd.s32 1, %s1445_s29  ;;  %s1453_s9 = sphi %s1511_s9, %s19_s9   ;;  %s1449_s30 = sphi %s1509_s30, %s1837_s30   ;;  %s1445_s29 = sphi %s1507_s29, %s1839_s29   ;;  %s1441_s28 = sphi %s1505_s28, %s1835_s28   ;;  %s1437_s27 = sphi %s1503_s27, %s1838_s27  }
   0x4   : > { %s31_s11 = sadd.s32 1, %s1449_s30  ;;  %p29_p0 = scmp.ge.s32.totalorder %s28_s10, 2 }
   0x5   : > { %p1211_p1 = scmp.ge.s32.totalorder %s1453_s9, 1  ;;  %p380_p2 = scmp.lt.s32.totalorder %s1453_s9, 5 }
   0x6   : > { %s1841_s10 = smov (%p29_p0, %s28_s10), 0  ;;  %s1843_s11 = smov (!%p29_p0, %s31_s11), %s1449_s30 }
   0x7   : > { %1825 = sst [smem:[#allocation3_spill]] %s1841_s10  ;;  %p381_p3 = pnand %p1211_p1, %p380_p2 }
   0x8   : > { %p33_p4 = scmp.ge.s32.totalorder %s1843_s11, 2  ;;  %s1212_s12 = sshll.u32 (!%p381_p3), %s1441_s28, 1 }
   0x9   : > { %384 = sbr.rel (%p381_p3) target bundleno = 354 (0x162), region = 48  ;;  %p516_p5 = scmp.lt.s32.totalorder (!%p381_p3), %s1441_s28, 1 }
   0xa   : > { %s1845_s11 = smov (%p33_p4, %s1843_s11), 0  ;;  %s1536_s13 = sadd.s32 (!%p381_p3), %s1437_s27, %s1212_s12 }
   0xb   : > { %1826 = sst [smem:[#allocation4_spill]] %s1845_s11  ;;  %p452_p6 = scmp.lt.s32.totalorder (!%p381_p3), %s1536_s13, 3 }
   0xc   : > { %s1827_s8 = sld [smem:[#allocation5_spill]] (!%p381_p3)  ;;  %p1227_p9 = scmp.ne.s32.totalorder (!%p381_p3), %s1437_s27, 0 }
   0xe   : > { %s1847_s28 = smov (!%p516_p5, %s1441_s28), 1 }
   0xf   : > { %s1540_s14 = scalar_select %p452_p6, %s1536_s13, 3 }
  0x10   : > { %s1284_s15 = sshll.u32 %s1847_s28, 4 }
  0x11   : > { %s1213_s16 = sshll.u32 %s1540_s14, 5  ;;  %s1216_s17 = sshll.u32 %s1540_s14, 1 }
  0x12   : > { %p455_p7 = scmp.lt.s32.totalorder %s1213_s16, 127  ;;  %p469_p8 = scmp.lt.s32.totalorder %s1216_s17, 7 }
  0x13   : > { %s1547_s20 = scalar_lea.vmem %s1827_s8, %s1284_s15  ;;  %529 = sbr.rel (%p1227_p9) target bundleno = 27 (0x1b), region = 52 }
  0x14   : > { %s1849_s16 = smov (!%p455_p7, %s1213_s16), 127  ;;  %s1851_s17 = smov (!%p469_p8, %s1216_s17), 7 }
  0x15   : > { %s1214_s22 = sshll.u32 %s1849_s16, 3  ;;  %s471_s12 = scalar_lea.vmem %s1814_s1, %s1851_s17 }
  0x16   : > { %s1555_s25 = scalar_lea.vmem %s1813_s0, %s1214_s22  ;;  %s484_s19 = scalar_lea.vmem %s1815_s2, %s1851_s17 }
  0x17   : > { %s497_s11 = scalar_lea.vmem %s1816_s3, %s1851_s17  ;;  %s510_s16 = scalar_lea.vmem %s1820_s7, %s1851_s17 }
  0x18   : > { %v1455_v0 = vmov 0.0  }
  0x19   : > { %530 = vst [vmem:[%s1547_s20] sm:$0xff] %v1455_v0 }
  0x1a   : > { %531 = vst [vmem:[%s1547_s20 + $0x8] sm:$0xff] %v1455_v0 }
  0x1b PF: > { %v561_v1 = vld [vmem:[%s1555_s25 + $0x78] sm:$0xff]  ;;  %vm608_vm0 = vcmask 261120   ;;  %v560_v3 = vld [vmem:[%s1555_s25 + $0x70] sm:$0xff]  ;;  %v559_v5 = vld [vmem:[%s1555_s25 + $0x68] sm:$0xff]  ;;  %v1456_v20 = vmov 0   ;;  %v1457_v29 = vmov 1  }
  0x1c   : > { %v577_v2 = vld [vmem:[%s1555_s25 + $0xf8] sm:$0xff]  ;;  %1228 = vmatpush.xpose.msk.msra.mxu0 %vm608_vm0, %v561_v1  ;;  %1285 = vmatpush.xpose.msk.msra.mxu2 %vm608_vm0, %v561_v1  ;;  %v576_v4 = vld [vmem:[%s1555_s25 + $0xf0] sm:$0xff]  ;;  %v575_v6 = vld [vmem:[%s1555_s25 + $0xe8] sm:$0xff]  ;;  %vm967_vm8 = vcmask 1040384   ;;  %p1277_p10 = scmp.ge.s32.totalorder %s1536_s13, 4 }
  0x1d   : > { %1250 = vmatpush.xpose.msk.msra.mxu1 %vm608_vm0, %v577_v2  ;;  %1301 = vmatpush.xpose.msk.msra.mxu3 %vm608_vm0, %v577_v2  ;;  %v558_v7 = vld [vmem:[%s1555_s25 + $0x60] sm:$0xff]  ;;  %v557_v9 = vld [vmem:[%s1555_s25 + $0x58] sm:$0xff]  ;;  %v556_v11 = vld [vmem:[%s1555_s25 + $0x50] sm:$0xff] }
  0x1e   : > { %v574_v8 = vld [vmem:[%s1555_s25 + $0xe0] sm:$0xff]  ;;  %v573_v10 = vld [vmem:[%s1555_s25 + $0xd8] sm:$0xff]  ;;  %v572_v12 = vld [vmem:[%s1555_s25 + $0xd0] sm:$0xff]  ;;  %1360 = vset.pattern.permute.xlu0 %v1456_v20  ;;  %1361 = vset.pattern.permute.xlu1 %v1456_v20 }
  0x1f   : > { %v555_v13 = vld [vmem:[%s1555_s25 + $0x48] sm:$0xff]  ;;  %v554_v15 = vld [vmem:[%s1555_s25 + $0x40] sm:$0xff]  ;;  %v553_v17 = vld [vmem:[%s1555_s25 + $0x38] sm:$0xff]  ;;  %1363 = vset.pattern.permute.xlu2 %v1457_v29 }
  0x20   : > { %1229 = vmatpush.xpose.msk.msra.mxu0 %vm608_vm0, %v560_v3  ;;  %1286 = vmatpush.xpose.msk.msra.mxu2 %vm608_vm0, %v560_v3  ;;  %v571_v14 = vld [vmem:[%s1555_s25 + $0xc8] sm:$0xff]  ;;  %v570_v16 = vld [vmem:[%s1555_s25 + $0xc0] sm:$0xff]  ;;  %v541_v18 = vld [vmem:[%s1818_s5 + $0x18] sm:$0xff] }
  0x21   : > { %1251 = vmatpush.xpose.msk.msra.mxu1 %vm608_vm0, %v576_v4  ;;  %1302 = vmatpush.xpose.msk.msra.mxu3 %vm608_vm0, %v576_v4  ;;  %v569_v19 = vld [vmem:[%s1555_s25 + $0xb8] sm:$0xff]  ;;  %v543_v21 = vld [vmem:[%s1818_s5 + $0x28] sm:$0xff]  ;;  %v552_v22 = vld [vmem:[%s1555_s25 + $0x30] sm:$0xff] }
  0x22   : > { %595 = vperm.xlu0 %1360, %v541_v18   ;;  %v568_v23 = vld [vmem:[%s1555_s25 + $0xb0] sm:$0xff]  ;;  %605 = vperm.xlu1 %1361, %v543_v21   ;;  %v542_v24 = vld [vmem:[%s1818_s5 + $0x20] sm:$0xff]  ;;  %v551_v25 = vld [vmem:[%s1555_s25 + $0x28] sm:$0xff] }
  0x23   : > { %v567_v26 = vld [vmem:[%s1555_s25 + $0xa8] sm:$0xff]  ;;  %v550_v27 = vld [vmem:[%s1555_s25 + $0x20] sm:$0xff]  ;;  %822 = vperm.xlu2 %1363, %v542_v24   ;;  %v549_v31 = vld [vmem:[%s1555_s25 + $0x18] sm:$0xff] }
  0x24   : > { %1230 = vmatpush.xpose.msk.msra.mxu0 %vm608_vm0, %v559_v5  ;;  %1287 = vmatpush.xpose.msk.msra.mxu2 %vm608_vm0, %v559_v5  ;;  %v566_v28 = vld [vmem:[%s1555_s25 + $0xa0] sm:$0xff]  ;;  %v565_v32 = vld [vmem:[%s1555_s25 + $0x98] sm:$0xff]  ;;  %v548_v33 = vld [vmem:[%s1555_s25 + $0x10] sm:$0xff] }
  0x25   : > { %1252 = vmatpush.xpose.msk.msra.mxu1 %vm608_vm0, %v575_v6  ;;  %1303 = vmatpush.xpose.msk.msra.mxu3 %vm608_vm0, %v575_v6  ;;  %v545_v30 = vld [vmem:[%s1819_s6 + $0x1] sm:$0x1]  ;;  %v564_v34 = vld [vmem:[%s1555_s25 + $0x90] sm:$0xff]  ;;  %v547_v37 = vld [vmem:[%s1555_s25 + $0x8] sm:$0xff] }
  0x26   : > { %v538_v35 = vld [vmem:[%s1818_s5] sm:$0xff]  ;;  %v540_v36 = vld [vmem:[%s1818_s5 + $0x10] sm:$0xff]  ;;  %v563_v38 = vld [vmem:[%s1555_s25 + $0x88] sm:$0xff] }
  0x27   : > { %v546_v39 = vld [vmem:[%s1555_s25] sm:$0xff]  ;;  %v539_v41 = vld [vmem:[%s1818_s5 + $0x8] sm:$0xff]  ;;  %v535_v43 = vld [vmem:[%s1817_s4 + $0x18] sm:$0xff] }
  0x28   : > { %1231 = vmatpush.xpose.msk.msra.mxu0 %vm608_vm0, %v558_v7  ;;  %1288 = vmatpush.xpose.msk.msra.mxu2 %vm608_vm0, %v558_v7  ;;  %v562_v40 = vld [vmem:[%s1555_s25 + $0x80] sm:$0xff]  ;;  %v533_v44 = vld [vmem:[%s1817_s4 + $0x8] sm:$0xff]  ;;  %v534_v47 = vld [vmem:[%s1817_s4 + $0x10] sm:$0xff] }
  0x29   : > { %1253 = vmatpush.xpose.msk.msra.mxu1 %vm608_vm0, %v574_v8  ;;  %1304 = vmatpush.xpose.msk.msra.mxu3 %vm608_vm0, %v574_v8  ;;  %v532_v42 = vld [vmem:[%s1817_s4] sm:$0xff]  ;;  %v537_v48 = vld [vmem:[%s1817_s4 + $0x28] sm:$0xff] }
  0x2a   : > { %600 = vperm.xlu0 %1360, %v542_v24   ;;  %1362 = vset.pattern.permute.xlu1 %v1457_v29  ;;  %v536_v45 = vld [vmem:[%s1817_s4 + $0x20] sm:$0xff] }
  0x2b   : > { %818 = vperm.xlu1 %1362, %v541_v18   ;;  %826 = vperm.xlu2 %1363, %v543_v21   ;;  %v544_v46 = vld [vmem:[%s1819_s6] sm:$0x1] }
  0x2c   : > { %1232 = vmatpush.xpose.msk.msra.mxu0 %vm608_vm0, %v557_v9  ;;  %1289 = vmatpush.xpose.msk.msra.mxu2 %vm608_vm0, %v557_v9 }
  0x2d   : > { %1254 = vmatpush.xpose.msk.msra.mxu1 %vm608_vm0, %v573_v10  ;;  %1305 = vmatpush.xpose.msk.msra.mxu3 %vm608_vm0, %v573_v10 }
  0x30   : > { %1233 = vmatpush.xpose.msk.msra.mxu0 %vm608_vm0, %v556_v11  ;;  %1290 = vmatpush.xpose.msk.msra.mxu2 %vm608_vm0, %v556_v11 }
  0x31   : > { %1255 = vmatpush.xpose.msk.msra.mxu1 %vm608_vm0, %v572_v12  ;;  %1306 = vmatpush.xpose.msk.msra.mxu3 %vm608_vm0, %v572_v12 }
  0x32   : > { %882 = vperm.xlu0 %1360, %v545_v30  }
  0x33   : > { %1364 = vset.pattern.permute.xlu1 %v1456_v20  ;;  %1365 = vset.pattern.permute.xlu2 %v1456_v20 }
  0x34   : > { %1234 = vmatpush.xpose.msk.msra.mxu0 %vm608_vm0, %v555_v13  ;;  %1291 = vmatpush.xpose.msk.msra.mxu2 %vm608_vm0, %v555_v13 }
  0x35   : > { %1256 = vmatpush.xpose.msk.msra.mxu1 %vm608_vm0, %v571_v14  ;;  %1307 = vmatpush.xpose.msk.msra.mxu3 %vm608_vm0, %v571_v14 }
  0x36   : > { %580 = vperm.xlu1 %1364, %v538_v35   ;;  %585 = vperm.xlu2 %1365, %v539_v41  }
  0x38   : > { %1235 = vmatpush.xpose.msk.msra.mxu0 %vm608_vm0, %v554_v15  ;;  %1292 = vmatpush.xpose.msk.msra.mxu2 %vm608_vm0, %v554_v15 }
  0x39   : > { %1257 = vmatpush.xpose.msk.msra.mxu1 %vm608_vm0, %v570_v16  ;;  %1308 = vmatpush.xpose.msk.msra.mxu3 %vm608_vm0, %v570_v16 }
  0x3a   : > { %590 = vperm.xlu0 %1360, %v540_v36  }
  0x3c   : > { %1236 = vmatpush.xpose.msk.msra.mxu0 %vm608_vm0, %v553_v17  ;;  %1293 = vmatpush.xpose.msk.msra.mxu2 %vm608_vm0, %v553_v17 }
  0x3d   : > { %1258 = vmatpush.xpose.msk.msra.mxu1 %vm608_vm0, %v569_v19  ;;  %1309 = vmatpush.xpose.msk.msra.mxu3 %vm608_vm0, %v569_v19 }
  0x3e   : > { %1366 = vset.pattern.permute.xlu1 %v1457_v29  ;;  %1367 = vset.pattern.permute.xlu2 %v1457_v29 }
  0x3f   : > { %806 = vperm.xlu1 %1366, %v538_v35   ;;  %810 = vperm.xlu2 %1367, %v539_v41  }
  0x40   : > { %1237 = vmatpush.xpose.msk.msra.mxu0 %vm608_vm0, %v552_v22  ;;  %1294 = vmatpush.xpose.msk.msra.mxu2 %vm608_vm0, %v552_v22 }
  0x41   : > { %1259 = vmatpush.xpose.msk.msra.mxu1 %vm608_vm0, %v568_v23  ;;  %1310 = vmatpush.xpose.msk.msra.mxu3 %vm608_vm0, %v568_v23 }
  0x42   : > { %1368 = vset.pattern.permute.xlu0 %v1457_v29 }
  0x43   : > { %814 = vperm.xlu0 %1368, %v540_v36  }
  0x44   : > { %1238 = vmatpush.xpose.msk.msra.mxu0 %vm608_vm0, %v551_v25  ;;  %1295 = vmatpush.xpose.msk.msra.mxu2 %vm608_vm0, %v551_v25 }
  0x45   : > { %1260 = vmatpush.xpose.msk.msra.mxu1 %vm608_vm0, %v567_v26  ;;  %1311 = vmatpush.xpose.msk.msra.mxu3 %vm608_vm0, %v567_v26 }
  0x47   : > { %1369 = vset.pattern.permute.xlu1 %v1456_v20 }
  0x48   : > { %1239 = vmatpush.xpose.msk.msra.mxu0 %vm608_vm0, %v550_v27  ;;  %1296 = vmatpush.xpose.msk.msra.mxu2 %vm608_vm0, %v550_v27 }
  0x49   : > { %1261 = vmatpush.xpose.msk.msra.mxu1 %vm608_vm0, %v566_v28  ;;  %1312 = vmatpush.xpose.msk.msra.mxu3 %vm608_vm0, %v566_v28 }
  0x4a   : > { %859 = vperm.xlu1 %1369, %v544_v46  }
  0x4b   : > { %1370 = vset.pattern.permute.xlu0 %v1456_v20 }
  0x4c   : > { %1240 = vmatpush.xpose.msk.msra.mxu0 %vm608_vm0, %v549_v31  ;;  %1297 = vmatpush.xpose.msk.msra.mxu2 %vm608_vm0, %v549_v31 }
  0x4d   : > { %1262 = vmatpush.xpose.msk.msra.mxu1 %vm608_vm0, %v565_v32  ;;  %1313 = vmatpush.xpose.msk.msra.mxu3 %vm608_vm0, %v565_v32 }
  0x50   : > { %1241 = vmatpush.xpose.msk.msra.mxu0 %vm608_vm0, %v548_v33  ;;  %1298 = vmatpush.xpose.msk.msra.mxu2 %vm608_vm0, %v548_v33 }
  0x51   : > { %1263 = vmatpush.xpose.msk.msra.mxu1 %vm608_vm0, %v564_v34  ;;  %1314 = vmatpush.xpose.msk.msra.mxu3 %vm608_vm0, %v564_v34 }
  0x54   : > { %1242 = vmatpush.xpose.msk.msra.mxu0 %vm608_vm0, %v547_v37  ;;  %1299 = vmatpush.xpose.msk.msra.mxu2 %vm608_vm0, %v547_v37 }
  0x55   : > { %1264 = vmatpush.xpose.msk.msra.mxu1 %vm608_vm0, %v563_v38  ;;  %1315 = vmatpush.xpose.msk.msra.mxu3 %vm608_vm0, %v563_v38 }
  0x58   : > { %1243 = vmatpush.xpose.msk.msra.mxu0 %vm608_vm0, %v546_v39  ;;  %1300 = vmatpush.xpose.msk.msra.mxu2 %vm608_vm0, %v546_v39 }
  0x59   : > { %1265 = vmatpush.xpose.msk.msra.mxu1 %vm608_vm0, %v562_v40  ;;  %1316 = vmatpush.xpose.msk.msra.mxu3 %vm608_vm0, %v562_v40 }
  0x5b   : > { %1244 = vmatmul.msk.f32.vlgmr.msra.gmra.mxu0 %vm608_vm0, %v532_v42  ;;  %1247 = vmatmul.msk.f32.vlgmr.msra.gmra.mxu2 %vm608_vm0, %v535_v43 }
  0x5c   : > { %1266 = vmatmul.msk.f32.vlgmr.msra.gmra.mxu1 %vm608_vm0, %v532_v42  ;;  %1269 = vmatmul.msk.f32.vlgmr.msra.gmra.mxu3 %vm608_vm0, %v535_v43 }
  0x63   : > { %1245 = vmatmul.msk.f32.gmra.mxu0 %vm608_vm0, %v533_v44  ;;  %1248 = vmatmul.msk.f32.gmra.mxu2 %vm608_vm0, %v536_v45 }
  0x64   : > { %1267 = vmatmul.msk.f32.gmra.mxu1 %vm608_vm0, %v533_v44  ;;  %1270 = vmatmul.msk.f32.gmra.mxu3 %vm608_vm0, %v536_v45 }
  0x6b   : > { %1246 = vmatmul.msk.f32.gmra.mxu0 %vm608_vm0, %v534_v47  ;;  %1249 = vmatmul.msk.f32.gmra.mxu2 %vm608_vm0, %v537_v48 }
  0x6c   : > { %1268 = vmatmul.msk.f32.gmra.mxu1 %vm608_vm0, %v534_v47  ;;  %1271 = vmatmul.msk.f32.gmra.mxu3 %vm608_vm0, %v537_v48 }
  0x7d   : > { %v823_v51 = vpop.permute.xlu2 %822 }
  0x85   : > { %v1732_v56 = vpop.permute.xlu2 %826 }
  0x90   : > { %v586_v3 = vpop.permute.xlu2 %585 }
  0x94   : > { %v596_v49 = vpop.permute.xlu0 %595  ;;  %v606_v50 = vpop.permute.xlu1 %605 }
  0x99   : > { %v811_v27 = vpop.permute.xlu2 %810 }
  0x9c   : > { %v601_v52 = vpop.permute.xlu0 %600 }
  0x9d   : > { %v819_v53 = vpop.permute.xlu1 %818 }
  0xa4   : > { %v1734_v60 = vpop.permute.xlu0 %882 }
  0xa8   : > { %v581_v61 = vpop.permute.xlu1 %580 }
  0xac   : > { %v591_v10 = vpop.permute.xlu0 %590 }
  0xb1   : > { %v807_v28 = vpop.permute.xlu1 %806 }
  0xb5   : > { %v815_v42 = vpop.permute.xlu0 %814 }
  0xd8   : > { %v740_v54 = vpop.f32.mrf.mxu0 }
  0xd9   : > { %v775_v55 = vpop.f32.mrf.mxu1  ;;  %v741_v63 = vadd.f32 %v740_v54, %v581_v61 }
  0xda   : > { %v776_v0 = vadd.f32 %v775_v55, %v581_v61 }
  0xdb   : > { %1371 = vtanh.f32 %v741_v63 }
  0xdc   : > { %1373 = vtanh.f32 %v776_v0 }
  0xde   : > { %v749_v57 = vpop.f32.mrf.mxu2 }
  0xdf   : > { %v784_v58 = vpop.f32.mrf.mxu3  ;;  %v750_v1 = vadd.f32 %v749_v57, %v596_v49 }
  0xe0   : > { %v743_v59 = vpop.f32.mrf.mxu0  ;;  %v785_v7 = vadd.f32 %v784_v58, %v596_v49 }
  0xe1   : > { %v778_v62 = vpop.f32.mrf.mxu1  ;;  %1375 = vtanh.f32 %v750_v1  ;;  %v744_v9 = vadd.f32 %v743_v59, %v586_v3  ;;  %v1372_v14 = vpop.eup %1371 }
  0xe2   : > { %v779_v11 = vadd.f32 %v778_v62, %v586_v3  ;;  %v1374_v16 = vpop.eup %1373  ;;  %v829_v36 = vmul.f32 %v1372_v14, %v807_v28 }
  0xe3   : > { %v830_v41 = vmul.f32 %v1374_v16, %v807_v28 }
  0xe6   : > { %v752_v2 = vpop.f32.mrf.mxu2 }
  0xe7   : > { %v753_v4 = vadd.f32 %v752_v2, %v601_v52  ;;  %v787_v5 = vpop.f32.mrf.mxu3  ;;  %v1376_v20 = vpop.eup %1375 }
  0xe8   : > { %v788_v6 = vadd.f32 %v787_v5, %v601_v52  ;;  %v746_v8 = vpop.f32.mrf.mxu0  ;;  %v835_v32 = vmul.f32 %v1376_v20, %v819_v53 }
  0xe9   : > { %1377 = vtanh.f32 %v753_v4  ;;  %v747_v12 = vadd.f32 %v746_v8, %v591_v10  ;;  %v781_v13 = vpop.f32.mrf.mxu1 }
  0xea   : > { %1379 = vtanh.f32 %v788_v6  ;;  %v782_v17 = vadd.f32 %v781_v13, %v591_v10 }
  0xeb   : > { %1381 = vtanh.f32 %v785_v7 }
  0xec   : > { %1383 = vtanh.f32 %v744_v9 }
  0xed   : > { %1385 = vtanh.f32 %v779_v11 }
  0xee   : > { %v755_v15 = vpop.f32.mrf.mxu2  ;;  %1387 = vtanh.f32 %v747_v12 }
  0xef   : > { %v756_v18 = vadd.f32 %v755_v15, %v606_v50  ;;  %v790_v19 = vpop.f32.mrf.mxu3  ;;  %v1378_v22 = vpop.eup %1377 }
  0xf0   : > { %v791_v21 = vadd.f32 %v790_v19, %v606_v50  ;;  %v1380_v23 = vpop.eup %1379  ;;  %v837_v26 = vmul.f32 %v1378_v22, %v823_v51  ;;  %v860_v22 = vpop.permute.xlu1 %859 }
  0xf1   : > { %1389 = vtanh.f32 %v756_v18  ;;  %v1382_v24 = vpop.eup %1381  ;;  %v838_v30 = vmul.f32 %v1380_v23, %v823_v51 }
  0xf2   : > { %1391 = vtanh.f32 %v791_v21  ;;  %v1384_v25 = vpop.eup %1383  ;;  %v836_v34 = vmul.f32 %v1382_v24, %v819_v53  ;;  %v864_v38 = vadd.f32 %v837_v26, %v835_v32 }
  0xf3   : > { %1393 = vtanh.f32 %v782_v17  ;;  %v1386_v29 = vpop.eup %1385  ;;  %v831_v35 = vmul.f32 %v1384_v25, %v811_v27 }
  0xf4   : > { %v1388_v31 = vpop.eup %1387  ;;  %v832_v40 = vmul.f32 %v1386_v29, %v811_v27  ;;  %v872_v44 = vadd.f32 %v838_v30, %v836_v34 }
  0xf5   : > { %v841_v48 = vadd.f32 %v831_v35, %v829_v36  ;;  %v833_v49 = vmul.f32 %v1388_v31, %v815_v42 }
  0xf6   : > { %v849_v51 = vadd.f32 %v832_v40, %v830_v41 }
  0xf7   : > { %v1390_v33 = vpop.eup %1389  ;;  %v842_v57 = vadd.f32 %v841_v48, %v833_v49 }
  0xf8   : > { %v1392_v37 = vpop.eup %1391  ;;  %v839_v39 = vmul.f32 %v1390_v33, %v1732_v56 }
  0xf9   : > { %v1394_v43 = vpop.eup %1393  ;;  %v840_v45 = vmul.f32 %v1392_v37, %v1732_v56  ;;  %v843_v0 = vrot.slane %v842_v57, 4 }
  0xfa   : > { %v865_v46 = vadd.f32 %v864_v38, %v839_v39  ;;  %v834_v52 = vmul.f32 %v1394_v43, %v815_v42 }
  0xfb   : > { %v873_v47 = vadd.f32 %v872_v44, %v840_v45  ;;  %v844_v5 = vadd.f32 %v843_v0, %v842_v57 }
  0xfc   : > { %v866_v50 = vrot.slane %v865_v46, 4  ;;  %v850_v59 = vadd.f32 %v849_v51, %v834_v52 }
  0xfd   : > { %v874_v53 = vrot.slane %v873_v47, 4  ;;  %v845_v11 = vrot.slane %v844_v5, 2 }
  0xfe   : > { %v867_v54 = vadd.f32 %v866_v50, %v865_v46  ;;  %v851_v2 = vrot.slane %v850_v59, 4 }
  0xff   : > { %v875_v55 = vadd.f32 %v874_v53, %v873_v47  ;;  %v846_v13 = vadd.f32 %v845_v11, %v844_v5  ;;  %v963_v47 = vld [vmem:[%s497_s11] sm:$0x3]  ;;  %s1830_s11 = sshll.u32 %s1540_s14, 8 }
 0x100   : > { %v868_v58 = vrot.slane %v867_v54, 2  ;;  %v852_v7 = vadd.f32 %v851_v2, %v850_v59  ;;  %v999_v2 = vlaneseq }
 0x101   : > { %v876_v61 = vrot.slane %v875_v55, 2  ;;  %v847_v18 = vrot.slane %v846_v13, 1 }
 0x102   : > { %v869_v62 = vadd.f32 %v868_v58, %v867_v54  ;;  %v853_v12 = vrot.slane %v852_v7, 2 }
 0x103   : > { %v877_v63 = vadd.f32 %v876_v61, %v875_v55  ;;  %v848_v21 = vadd.f32 %v847_v18, %v846_v13 }
 0x104   : > { %v870_v1 = vrot.slane %v869_v62, 1  ;;  %v854_v14 = vadd.f32 %v853_v12, %v852_v7  ;;  %v1002_v12 = vstv %s1830_s11 }
 0x105   : > { %v878_v56 = vrot.slane %v877_v63, 1  ;;  %v862_v24 = vadd.f32 %v860_v22, %v848_v21 }
 0x106   : > { %v871_v3 = vadd.f32 %v870_v1, %v869_v62  ;;  %v855_v20 = vrot.slane %v854_v14, 1 }
 0x107   : > { %v879_v4 = vadd.f32 %v878_v56, %v877_v63  ;;  %v1272_v31 = vmul.f32 -1.442695, %v862_v24 }
 0x108   : > { %v885_v6 = vadd.f32 %v1734_v60, %v871_v3  ;;  %v856_v23 = vadd.f32 %v855_v20, %v854_v14 }
 0x109   : > { %v886_v8 = vadd.f32 %v1734_v60, %v879_v4 }
 0x10a   : > { %v1274_v9 = vmul.f32 -1.442695, %v885_v6  ;;  %v863_v27 = vadd.f32 %v860_v22, %v856_v23  ;;  %v1000_v6 = vand.u32 127, %v999_v2 }
 0x10b   : > { %v1275_v10 = vmul.f32 -1.442695, %v886_v8 }
 0x10c   : > { %1395 = vpow2.f32 %v1274_v9  ;;  %v1273_v34 = vmul.f32 -1.442695, %v863_v27  ;;  %v1001_v14 = vadd.s32 128, %v1000_v6 }
 0x10d   : > { %1397 = vpow2.f32 %v1275_v10 }
 0x112   : > { %v1396_v15 = vpop.eup %1395 }
 0x113   : > { %v1398_v16 = vpop.eup %1397  ;;  %v931_v17 = vadd.f32 1.0, %v1396_v15 }
 0x114   : > { %v932_v19 = vadd.f32 1.0, %v1398_v16 }
 0x115   : > { %1399 = vrcp.f32 %v931_v17  ;;  %vm938_vm3 = vweird.f32 %v931_v17  ;;  %v944_v37 = vand.u32 2147483648, %v931_v17  ;;  %v942_v41 = vand.u32 2147483647, %v931_v17 }
 0x116   : > { %1401 = vrcp.f32 %v932_v19  ;;  %v959_v33 = vand.u32 2147483648, %v932_v19  ;;  %v957_v36 = vand.u32 2147483647, %v932_v19  ;;  %vm953_vm5 = vweird.f32 %v932_v19 }
 0x117   : > { %1403 = vpow2.f32 %v1272_v31  ;;  %v945_v45 = vor.u32 1.1754944e-38, %v944_v37  ;;  %vm943_vm9 = vcmp.eq.f32.partialorder %v942_v41, 8.507059e+37 }
 0x118   : > { %v960_v42 = vor.u32 1.1754944e-38, %v959_v33  ;;  %1405 = vpow2.f32 %v1273_v34  ;;  %vm958_vm7 = vcmp.eq.f32.partialorder %v957_v36, 8.507059e+37 }
 0x11b   : > { %v1400_v60 = vpop.eup %1399 }
 0x11c   : > { %v1402_v25 = vpop.eup %1401  ;;  %v934_v26 = vmul.f32 %v1400_v60, %v931_v17  ;;  %vm939_vm1 = vweird.f32 %v1400_v60 }
 0x11d   : > { %v949_v28 = vmul.f32 %v1402_v25, %v932_v19  ;;  %vm954_vm2 = vweird.f32 %v1402_v25  ;;  %vm1740_vm4 = vmor %vm938_vm3, %vm939_vm1  ;;  %v1404_v50 = vpop.eup %1403 }
 0x11e   : > { %v935_v29 = vsub.f32 1.0, %v934_v26  ;;  %vm955_vm6 = vmor %vm953_vm5, %vm954_vm2  ;;  %v1406_v52 = vpop.eup %1405  ;;  %v893_v54 = vadd.f32 1.0, %v1404_v50 }
 0x11f   : > { %v950_v30 = vsub.f32 1.0, %v949_v28  ;;  %v894_v57 = vadd.f32 1.0, %v1406_v52 }
 0x120   : > { %v936_v32 = vmul.f32 %v1400_v60, %v935_v29  ;;  %vm900_vm0 = vweird.f32 %v893_v54  ;;  %v906_v19 = vand.u32 2147483648, %v893_v54  ;;  %v904_v23 = vand.u32 2147483647, %v893_v54 }
 0x121   : > { %v951_v35 = vmul.f32 %v1402_v25, %v950_v30  ;;  %v921_v20 = vand.u32 2147483648, %v894_v57  ;;  %vm915_vm2 = vweird.f32 %v894_v57  ;;  %v1003_v29 = vadd.s32 %v1002_v12, %v1000_v6 }
 0x122   : > { %v937_v38 = vadd.f32 %v1400_v60, %v936_v32  ;;  %v907_v30 = vor.u32 1.1754944e-38, %v906_v19 }
 0x123   : > { %v952_v40 = vadd.f32 %v1402_v25, %v951_v35  ;;  %v922_v31 = vor.u32 1.1754944e-38, %v921_v20 }
 0x124   : > { %v941_v43 = vsel %vm1740_vm4, %v1400_v60, %v937_v38  ;;  %v919_v60 = vand.u32 2147483647, %v894_v57  ;;  %vm905_vm4 = vcmp.eq.f32.partialorder %v904_v23, 8.507059e+37 }
 0x125   : > { %v956_v44 = vsel %vm955_vm6, %v1402_v25, %v952_v40  ;;  %v946_v49 = vsel %vm943_vm9, %v945_v45, %v941_v43  ;;  %v1004_v25 = vadd.s32 %v1002_v12, %v1001_v14  ;;  %vm1761_vm9 = vcmp.lt.s32.totalorder %v999_v2, 256 }
 0x126   : > { %v961_v46 = vsel %vm958_vm7, %v960_v42, %v956_v44  ;;  %vm920_vm5 = vcmp.eq.f32.partialorder %v919_v60, 8.507059e+37  ;;  %vm1005_vm7 = vcmp.lt.s32.totalorder %v1003_v29, 1024 }
 0x127   : > { %v966_v48 = vrot.slane %v961_v46, 7  ;;  %vm1006_vm6 = vcmp.lt.s32.totalorder %v1004_v25, 1024 }
 0x129   : > { %v968_v51 = vsel %vm967_vm8, %v946_v49, %v966_v48 }
 0x12a   : > { %v970_v53 = vsub.f32 %v963_v47, %v968_v51 }
 0x12c   : > { %v1276_v55 = vmul.f32 -1.442695, %v970_v53 }
 0x12e   : > { %1407 = vpow2.f32 %v1276_v55 }
 0x12f   : > { %1409 = vrcp.f32 %v893_v54 }
 0x130   : > { %1411 = vrcp.f32 %v894_v57 }
 0x134   : > { %v1408_v58 = vpop.eup %1407 }
 0x135   : > { %v974_v59 = vadd.f32 1.0, %v1408_v58  ;;  %v1410_v61 = vpop.eup %1409 }
 0x136   : > { %v1412_v62 = vpop.eup %1411  ;;  %v896_v63 = vmul.f32 %v1410_v61, %v893_v54  ;;  %vm901_vm12 = vweird.f32 %v1410_v61 }
 0x137   : > { %1413 = vrcp.f32 %v974_v59  ;;  %v911_v0 = vmul.f32 %v1412_v62, %v894_v57  ;;  %v986_v8 = vand.u32 2147483648, %v974_v59  ;;  %v984_v11 = vand.u32 2147483647, %v974_v59  ;;  %vm1754_vm1 = vmor %vm900_vm0, %vm901_vm12 }
 0x138   : > { %v897_v56 = vsub.f32 1.0, %v896_v63  ;;  %vm980_vm11 = vweird.f32 %v974_v59  ;;  %vm916_vm13 = vweird.f32 %v1412_v62 }
 0x139   : > { %v912_v3 = vsub.f32 1.0, %v911_v0  ;;  %v987_v15 = vor.u32 1.1754944e-38, %v986_v8  ;;  %vm985_vm15 = vcmp.eq.f32.partialorder %v984_v11, 8.507059e+37  ;;  %vm917_vm3 = vmor %vm915_vm2, %vm916_vm13 }
 0x13a   : > { %v898_v7 = vmul.f32 %v1410_v61, %v897_v56 }
 0x13b   : > { %v913_v9 = vmul.f32 %v1412_v62, %v912_v3 }
 0x13c   : > { %v899_v16 = vadd.f32 %v1410_v61, %v898_v7 }
 0x13d   : > { %v1414_v1 = vpop.eup %1413  ;;  %v914_v17 = vadd.f32 %v1412_v62, %v913_v9 }
 0x13e   : > { %v976_v4 = vmul.f32 %v1414_v1, %v974_v59  ;;  %vm981_vm10 = vweird.f32 %v1414_v1  ;;  %v903_v26 = vsel %vm1754_vm1, %v1410_v61, %v899_v16 }
 0x13f   : > { %vm982_vm14 = vmor %vm980_vm11, %vm981_vm10  ;;  %v918_v27 = vsel %vm917_vm3, %v1412_v62, %v914_v17  ;;  %v908_v34 = vsel %vm905_vm4, %v907_v30, %v903_v26 }
 0x140   : > { %v977_v5 = vsub.f32 1.0, %v976_v4  ;;  %v923_v35 = vsel %vm920_vm5, %v922_v31, %v918_v27 }
 0x142   : > { %v978_v10 = vmul.f32 %v1414_v1, %v977_v5 }
 0x144   : > { %v979_v13 = vadd.f32 %v1414_v1, %v978_v10 }
 0x146   : > { %v983_v18 = vsel %vm982_vm14, %v1414_v1, %v979_v13 }
 0x147   : > { %v988_v21 = vsel %vm985_vm15, %v987_v15, %v983_v18 }
 0x148   : > { %v990_v24 = vsub.f32 1.0, %v988_v21 }
 0x14a   : > { %v991_v28 = vmul.f32 %v990_v24, %v988_v21 }
 0x14c   : > { %v993_v32 = vperm.slane %v991_v28, 0  ;;  %v994_v33 = vperm.slane %v991_v28, 1 }
 0x14e   : > { %v997_v36 = vmul.f32 %v993_v32, %v908_v34  ;;  %v998_v37 = vmul.f32 %v994_v33, %v923_v35 }
 0x150   : > { %v1008_v38 = vsel %vm1006_vm6, %v998_v37, 0.0  ;;  %v1007_v41 = vsel %vm1005_vm7, %v997_v36, 0.0  ;;  %1022 = sbr.rel (%p1277_p10) target bundleno = 354 (0x162), region = 56 }
 0x151   : > { %v1011_v40 = vrot.slane %v1008_v38, 7 }
 0x153   : > { %v1012_v42 = vsel %vm967_vm8, %v1007_v41, %v1011_v40 }
 0x154   : > { %1018 = vst.msk [vmem:[%s510_s16] sm:$0x3] %vm1761_vm9, %v1012_v42 }
 0x155   : > { %v1023_v43 = vld [vmem:[%s1547_s20] ss:$8 sm:$0x3]  ;;  %v1278_v55 = vld [vmem:[%s1547_s20 + $0x1] ss:$8 sm:$0x3] }
 0x156   : > { %v1024_v44 = vadd.f32 %v1023_v43, %v1012_v42  ;;  %v1029_v45 = vld [vmem:[%s471_s12] sm:$0x3]  ;;  %v1280_v58 = vld [vmem:[%s1547_s20 + $0x2] ss:$8 sm:$0x3] }
 0x157   : > { %v1031_v46 = vperm.slane %v1029_v45, 0  ;;  %v1032_v47 = vperm.slane %v1029_v45, 1  ;;  %v1047_v48 = vld [vmem:[%s484_s19] sm:$0x3] }
 0x158   : > { %1025 = vst.msk [vmem:[%s1547_s20] ss:$8 sm:$0x3] %vm1761_vm9, %v1024_v44  ;;  %v1049_v49 = vperm.slane %v1047_v48, 0  ;;  %v1050_v50 = vperm.slane %v1047_v48, 1 }
 0x159   : > { %v1035_v51 = vmul.f32 %v1031_v46, %v1007_v41  ;;  %v1036_v52 = vmul.f32 %v1032_v47, %v1008_v38 }
 0x15a   : > { %v1053_v53 = vmul.f32 %v1049_v49, %v1007_v41  ;;  %v1054_v54 = vmul.f32 %v1050_v50, %v1008_v38 }
 0x15b   : > { %v1039_v57 = vrot.slane %v1036_v52, 7 }
 0x15c   : > { %v1057_v59 = vrot.slane %v1054_v54, 7 }
 0x15d   : > { %v1040_v61 = vsel %vm967_vm8, %v1035_v51, %v1039_v57 }
 0x15e   : > { %v1042_v62 = vadd.f32 %v1278_v55, %v1040_v61  ;;  %v1058_v63 = vsel %vm967_vm8, %v1053_v53, %v1057_v59 }
 0x15f   : > { %v1060_v0 = vadd.f32 %v1280_v58, %v1058_v63 }
 0x160   : > { %1279 = vst.msk [vmem:[%s1547_s20 + $0x1] ss:$8 sm:$0x3] %vm1761_vm9, %v1042_v62 }
 0x161   : > { %1281 = vst.msk [vmem:[%s1547_s20 + $0x2] ss:$8 sm:$0x3] %vm1761_vm9, %v1060_v0 }
 0x162 PF: > { %s19_s9 = sadd.s32 1, %s1453_s9   ;;  %s1835_s28 = sld [smem:[#allocation2_spill]] }
 0x163   : > { %p16_p11 = scmp.ge.s32.totalorder %s19_s9, 6   ;;  %s1836_s13 = sld [smem:[#allocation3_spill]] }
 0x164   : > { %s1837_s30 = sld [smem:[#allocation4_spill]]  ;;  %s1838_s27 = smov %s1445_s29 }
 0x165   :  { %18 = sbr.rel (!%p16_p11) target bundleno = 3 (0x3), region = 109 }
 0x169   : > { %s1839_s29 = smov %s1836_s13 }

// kernel: ctpm_forward.3
= control target key start
LH: loop header
LB: loop body
LE: loop exit
PB: predicated region body
PF: predicated region fallthrough
CT: control target
= control target key end

     0   :  { %s1414_s27 = smov 0   ;;  %s1416_s28 = smov 0   ;;  %s1691_s0 = inlined_call_operand.vmem [shape: f32[512,32], index: 0, kind: input, shape index: {}]   ;;  %s1692_s1 = inlined_call_operand.vmem [shape: f32[1,512], index: 1, kind: input, shape index: {}]   ;;  %s1693_s2 = inlined_call_operand.vmem [shape: f32[1,512], index: 2, kind: input, shape index: {}]   ;;  %s1694_s3 = inlined_call_operand.vmem [shape: f32[1,512], index: 3, kind: input, shape index: {}]   ;;  %s1695_s4 = inlined_call_operand.vmem [shape: f32[48,32], index: 4, kind: input, shape index: {}]   ;;  %s1696_s5 = inlined_call_operand.vmem [shape: f32[48,2], index: 5, kind: input, shape index: {}]   ;;  %s1697_s6 = inlined_call_operand.vmem [shape: f32[2,1], index: 6, kind: input, shape index: {}]   ;;  %s1698_s7 = inlined_call_operand.vmem [shape: f32[1,512], index: 7, kind: output, shape index: {0}]   ;;  %s1699_s8 = inlined_call_operand.vmem [shape: f32[2,8,256], index: 8, kind: output, shape index: {1}]  }
   0x1   :  { %s1418_s29 = smov 0  }
   0x2 LB: > { %s31_s30 = sadd.s32 1, %s1360_s28  ;;  %p1161_p0 = scmp.ge.s32.totalorder %s1364_s29, 1  ;;  %s1364_s29 = sphi %s1418_s29, %s19_s29   ;;  %s1360_s28 = sphi %s1416_s28, %s1707_s28   ;;  %s1356_s27 = sphi %s1414_s27, %s1706_s27  }
   0x3   : > { %p33_p1 = scmp.ge.s32.totalorder %s31_s30, 2  ;;  %p362_p2 = scmp.lt.s32.totalorder %s1364_s29, 3 }
   0x5   : > { %s1709_s30 = smov (%p33_p1, %s31_s30), 0  ;;  %p363_p3 = pnand %p1161_p0, %p362_p2 }
   0x6   : > { %p428_p4 = scmp.lt.s32.totalorder (!%p363_p3), %s1356_s27, 1  ;;  %p1220_p7 = scmp.ge.s32.totalorder (!%p363_p3), %s1356_s27, 2 }
   0x7   : > { %366 = sbr.rel (%p363_p3) target bundleno = 347 (0x15b), region = 48 }
   0xc   : > { %s1436_s9 = scalar_select %p428_p4, %s1356_s27, 1  ;;  %v1366_v0 = vmov 0.0   ;;  %vm574_vm0 = vcmask 261120   ;;  %v507_v18 = vld [vmem:[%s1696_s5 + $0x18] sm:$0xff]  ;;  %v1367_v20 = vmov 0   ;;  %v509_v21 = vld [vmem:[%s1696_s5 + $0x28] sm:$0xff] }
   0xd   : > { %1287 = vset.pattern.permute.xlu0 %v1367_v20  ;;  %1288 = vset.pattern.permute.xlu1 %v1367_v20  ;;  %v508_v24 = vld [vmem:[%s1696_s5 + $0x20] sm:$0xff]  ;;  %v1368_v29 = vmov 1   ;;  %v506_v36 = vld [vmem:[%s1696_s5 + $0x10] sm:$0xff]  ;;  %v505_v41 = vld [vmem:[%s1696_s5 + $0x8] sm:$0xff]  ;;  %vm933_vm8 = vcmask 1040384  }
   0xe   : > { %s1162_s10 = sshll.u32 %s1436_s9, 5  ;;  %s1227_s11 = sshll.u32 %s1436_s9, 4  ;;  %561 = vperm.xlu0 %1287, %v507_v18   ;;  %571 = vperm.xlu1 %1288, %v509_v21   ;;  %v511_v30 = vld [vmem:[%s1697_s6 + $0x1] sm:$0x1]  ;;  %v501_v43 = vld [vmem:[%s1695_s4 + $0x18] sm:$0xff]  ;;  %v499_v44 = vld [vmem:[%s1695_s4 + $0x8] sm:$0xff] }
   0xf   : > { %p431_p5 = scmp.lt.s32.totalorder %s1162_s10, 63  ;;  %s1443_s14 = scalar_lea.vmem %s1699_s8, %s1227_s11  ;;  %1290 = vset.pattern.permute.xlu2 %v1368_v29  ;;  %v504_v35 = vld [vmem:[%s1696_s5] sm:$0xff]  ;;  %v500_v47 = vld [vmem:[%s1695_s4 + $0x10] sm:$0xff]  ;;  %v503_v48 = vld [vmem:[%s1695_s4 + $0x28] sm:$0xff] }
  0x10   : > { %496 = vst [vmem:[%s1443_s14] sm:$0xff] %v1366_v0  ;;  %788 = vperm.xlu2 %1290, %v508_v24   ;;  %v498_v42 = vld [vmem:[%s1695_s4] sm:$0xff]  ;;  %s1170_s25 = sshll.u32 %s1436_s9, 8 }
  0x11   : > { %s1711_s10 = smov (!%p431_p5, %s1162_s10), 63  ;;  %497 = vst [vmem:[%s1443_s14 + $0x8] sm:$0xff] %v1366_v0  ;;  %v502_v45 = vld [vmem:[%s1695_s4 + $0x20] sm:$0xff] }
  0x12   : > { %s1163_s15 = sshll.u32 %s1711_s10, 3  ;;  %v510_v46 = vld [vmem:[%s1697_s6] sm:$0x1] }
  0x13   : > { %s1450_s18 = scalar_lea.vmem %s1691_s0, %s1163_s15  ;;  %s1164_s15 = sshll.u32 %s1436_s9, 1 }
  0x14   : > { %v527_v1 = vld [vmem:[%s1450_s18 + $0x78] sm:$0xff]  ;;  %v526_v3 = vld [vmem:[%s1450_s18 + $0x70] sm:$0xff]  ;;  %v525_v5 = vld [vmem:[%s1450_s18 + $0x68] sm:$0xff]  ;;  %p443_p6 = scmp.lt.s32.totalorder %s1164_s15, 3 }
  0x15   : > { %v543_v2 = vld [vmem:[%s1450_s18 + $0xf8] sm:$0xff]  ;;  %1171 = vmatpush.xpose.msk.msra.mxu0 %vm574_vm0, %v527_v1  ;;  %1228 = vmatpush.xpose.msk.msra.mxu2 %vm574_vm0, %v527_v1  ;;  %v542_v4 = vld [vmem:[%s1450_s18 + $0xf0] sm:$0xff]  ;;  %v541_v6 = vld [vmem:[%s1450_s18 + $0xe8] sm:$0xff] }
  0x16   : > { %1193 = vmatpush.xpose.msk.msra.mxu1 %vm574_vm0, %v543_v2  ;;  %1244 = vmatpush.xpose.msk.msra.mxu3 %vm574_vm0, %v543_v2  ;;  %v524_v7 = vld [vmem:[%s1450_s18 + $0x60] sm:$0xff]  ;;  %v523_v9 = vld [vmem:[%s1450_s18 + $0x58] sm:$0xff]  ;;  %v522_v11 = vld [vmem:[%s1450_s18 + $0x50] sm:$0xff]  ;;  %s1713_s15 = smov (!%p443_p6, %s1164_s15), 3 }
  0x17   : > { %v540_v8 = vld [vmem:[%s1450_s18 + $0xe0] sm:$0xff]  ;;  %v539_v10 = vld [vmem:[%s1450_s18 + $0xd8] sm:$0xff]  ;;  %v538_v12 = vld [vmem:[%s1450_s18 + $0xd0] sm:$0xff]  ;;  %566 = vperm.xlu0 %1287, %v508_v24   ;;  %1289 = vset.pattern.permute.xlu1 %v1368_v29  ;;  %s445_s19 = scalar_lea.vmem %s1692_s1, %s1713_s15  ;;  %s467_s24 = scalar_lea.vmem %s1694_s3, %s1713_s15 }
  0x18   : > { %v521_v13 = vld [vmem:[%s1450_s18 + $0x48] sm:$0xff]  ;;  %v520_v15 = vld [vmem:[%s1450_s18 + $0x40] sm:$0xff]  ;;  %v519_v17 = vld [vmem:[%s1450_s18 + $0x38] sm:$0xff]  ;;  %784 = vperm.xlu1 %1289, %v507_v18   ;;  %792 = vperm.xlu2 %1290, %v509_v21   ;;  %s478_s10 = scalar_lea.vmem %s1698_s7, %s1713_s15 }
  0x19   : > { %1172 = vmatpush.xpose.msk.msra.mxu0 %vm574_vm0, %v526_v3  ;;  %1229 = vmatpush.xpose.msk.msra.mxu2 %vm574_vm0, %v526_v3  ;;  %v537_v14 = vld [vmem:[%s1450_s18 + $0xc8] sm:$0xff]  ;;  %v536_v16 = vld [vmem:[%s1450_s18 + $0xc0] sm:$0xff]  ;;  %v535_v19 = vld [vmem:[%s1450_s18 + $0xb8] sm:$0xff] }
  0x1a   : > { %1194 = vmatpush.xpose.msk.msra.mxu1 %vm574_vm0, %v542_v4  ;;  %1245 = vmatpush.xpose.msk.msra.mxu3 %vm574_vm0, %v542_v4  ;;  %v518_v22 = vld [vmem:[%s1450_s18 + $0x30] sm:$0xff]  ;;  %v517_v25 = vld [vmem:[%s1450_s18 + $0x28] sm:$0xff]  ;;  %v516_v27 = vld [vmem:[%s1450_s18 + $0x20] sm:$0xff] }
  0x1b   : > { %v534_v23 = vld [vmem:[%s1450_s18 + $0xb0] sm:$0xff]  ;;  %v533_v26 = vld [vmem:[%s1450_s18 + $0xa8] sm:$0xff]  ;;  %v532_v28 = vld [vmem:[%s1450_s18 + $0xa0] sm:$0xff] }
  0x1c   : > { %v515_v31 = vld [vmem:[%s1450_s18 + $0x18] sm:$0xff]  ;;  %v514_v33 = vld [vmem:[%s1450_s18 + $0x10] sm:$0xff]  ;;  %v513_v37 = vld [vmem:[%s1450_s18 + $0x8] sm:$0xff] }
  0x1d   : > { %1173 = vmatpush.xpose.msk.msra.mxu0 %vm574_vm0, %v525_v5  ;;  %1230 = vmatpush.xpose.msk.msra.mxu2 %vm574_vm0, %v525_v5  ;;  %v531_v32 = vld [vmem:[%s1450_s18 + $0x98] sm:$0xff]  ;;  %v530_v34 = vld [vmem:[%s1450_s18 + $0x90] sm:$0xff]  ;;  %v529_v38 = vld [vmem:[%s1450_s18 + $0x88] sm:$0xff] }
  0x1e   : > { %1195 = vmatpush.xpose.msk.msra.mxu1 %vm574_vm0, %v541_v6  ;;  %1246 = vmatpush.xpose.msk.msra.mxu3 %vm574_vm0, %v541_v6  ;;  %v512_v39 = vld [vmem:[%s1450_s18] sm:$0xff] }
  0x1f   : > { %848 = vperm.xlu0 %1287, %v511_v30   ;;  %v528_v40 = vld [vmem:[%s1450_s18 + $0x80] sm:$0xff]  ;;  %s456_s18 = scalar_lea.vmem %s1693_s2, %s1713_s15 }
  0x20   : > { %1291 = vset.pattern.permute.xlu1 %v1367_v20  ;;  %1292 = vset.pattern.permute.xlu2 %v1367_v20 }
  0x21   : > { %1174 = vmatpush.xpose.msk.msra.mxu0 %vm574_vm0, %v524_v7  ;;  %1231 = vmatpush.xpose.msk.msra.mxu2 %vm574_vm0, %v524_v7 }
  0x22   : > { %1196 = vmatpush.xpose.msk.msra.mxu1 %vm574_vm0, %v540_v8  ;;  %1247 = vmatpush.xpose.msk.msra.mxu3 %vm574_vm0, %v540_v8 }
  0x23   : > { %546 = vperm.xlu1 %1291, %v504_v35   ;;  %551 = vperm.xlu2 %1292, %v505_v41  }
  0x25   : > { %1175 = vmatpush.xpose.msk.msra.mxu0 %vm574_vm0, %v523_v9  ;;  %1232 = vmatpush.xpose.msk.msra.mxu2 %vm574_vm0, %v523_v9 }
  0x26   : > { %1197 = vmatpush.xpose.msk.msra.mxu1 %vm574_vm0, %v539_v10  ;;  %1248 = vmatpush.xpose.msk.msra.mxu3 %vm574_vm0, %v539_v10 }
  0x27   : > { %556 = vperm.xlu0 %1287, %v506_v36  }
  0x29   : > { %1176 = vmatpush.xpose.msk.msra.mxu0 %vm574_vm0, %v522_v11  ;;  %1233 = vmatpush.xpose.msk.msra.mxu2 %vm574_vm0, %v522_v11 }
  0x2a   : > { %1198 = vmatpush.xpose.msk.msra.mxu1 %vm574_vm0, %v538_v12  ;;  %1249 = vmatpush.xpose.msk.msra.mxu3 %vm574_vm0, %v538_v12 }
  0x2b   : > { %1293 = vset.pattern.permute.xlu1 %v1368_v29  ;;  %1294 = vset.pattern.permute.xlu2 %v1368_v29 }
  0x2c   : > { %772 = vperm.xlu1 %1293, %v504_v35   ;;  %776 = vperm.xlu2 %1294, %v505_v41  }
  0x2d   : > { %1177 = vmatpush.xpose.msk.msra.mxu0 %vm574_vm0, %v521_v13  ;;  %1234 = vmatpush.xpose.msk.msra.mxu2 %vm574_vm0, %v521_v13 }
  0x2e   : > { %1199 = vmatpush.xpose.msk.msra.mxu1 %vm574_vm0, %v537_v14  ;;  %1250 = vmatpush.xpose.msk.msra.mxu3 %vm574_vm0, %v537_v14 }
  0x2f   : > { %1295 = vset.pattern.permute.xlu0 %v1368_v29 }
  0x30   : > { %780 = vperm.xlu0 %1295, %v506_v36  }
  0x31   : > { %1178 = vmatpush.xpose.msk.msra.mxu0 %vm574_vm0, %v520_v15  ;;  %1235 = vmatpush.xpose.msk.msra.mxu2 %vm574_vm0, %v520_v15 }
  0x32   : > { %1200 = vmatpush.xpose.msk.msra.mxu1 %vm574_vm0, %v536_v16  ;;  %1251 = vmatpush.xpose.msk.msra.mxu3 %vm574_vm0, %v536_v16 }
  0x34   : > { %1296 = vset.pattern.permute.xlu1 %v1367_v20 }
  0x35   : > { %1179 = vmatpush.xpose.msk.msra.mxu0 %vm574_vm0, %v519_v17  ;;  %1236 = vmatpush.xpose.msk.msra.mxu2 %vm574_vm0, %v519_v17 }
  0x36   : > { %1201 = vmatpush.xpose.msk.msra.mxu1 %vm574_vm0, %v535_v19  ;;  %1252 = vmatpush.xpose.msk.msra.mxu3 %vm574_vm0, %v535_v19 }
  0x37   : > { %825 = vperm.xlu1 %1296, %v510_v46  }
  0x38   : > { %1297 = vset.pattern.permute.xlu0 %v1367_v20 }
  0x39   : > { %1180 = vmatpush.xpose.msk.msra.mxu0 %vm574_vm0, %v518_v22  ;;  %1237 = vmatpush.xpose.msk.msra.mxu2 %vm574_vm0, %v518_v22 }
  0x3a   : > { %1202 = vmatpush.xpose.msk.msra.mxu1 %vm574_vm0, %v534_v23  ;;  %1253 = vmatpush.xpose.msk.msra.mxu3 %vm574_vm0, %v534_v23 }
  0x3d   : > { %1181 = vmatpush.xpose.msk.msra.mxu0 %vm574_vm0, %v517_v25  ;;  %1238 = vmatpush.xpose.msk.msra.mxu2 %vm574_vm0, %v517_v25 }
  0x3e   : > { %1203 = vmatpush.xpose.msk.msra.mxu1 %vm574_vm0, %v533_v26  ;;  %1254 = vmatpush.xpose.msk.msra.mxu3 %vm574_vm0, %v533_v26 }
  0x41   : > { %1182 = vmatpush.xpose.msk.msra.mxu0 %vm574_vm0, %v516_v27  ;;  %1239 = vmatpush.xpose.msk.msra.mxu2 %vm574_vm0, %v516_v27 }
  0x42   : > { %1204 = vmatpush.xpose.msk.msra.mxu1 %vm574_vm0, %v532_v28  ;;  %1255 = vmatpush.xpose.msk.msra.mxu3 %vm574_vm0, %v532_v28 }
  0x45   : > { %1183 = vmatpush.xpose.msk.msra.mxu0 %vm574_vm0, %v515_v31  ;;  %1240 = vmatpush.xpose.msk.msra.mxu2 %vm574_vm0, %v515_v31 }
  0x46   : > { %1205 = vmatpush.xpose.msk.msra.mxu1 %vm574_vm0, %v531_v32  ;;  %1256 = vmatpush.xpose.msk.msra.mxu3 %vm574_vm0, %v531_v32 }
  0x49   : > { %1184 = vmatpush.xpose.msk.msra.mxu0 %vm574_vm0, %v514_v33  ;;  %1241 = vmatpush.xpose.msk.msra.mxu2 %vm574_vm0, %v514_v33 }
  0x4a   : > { %1206 = vmatpush.xpose.msk.msra.mxu1 %vm574_vm0, %v530_v34  ;;  %1257 = vmatpush.xpose.msk.msra.mxu3 %vm574_vm0, %v530_v34 }
  0x4d   : > { %1185 = vmatpush.xpose.msk.msra.mxu0 %vm574_vm0, %v513_v37  ;;  %1242 = vmatpush.xpose.msk.msra.mxu2 %vm574_vm0, %v513_v37 }
  0x4e   : > { %1207 = vmatpush.xpose.msk.msra.mxu1 %vm574_vm0, %v529_v38  ;;  %1258 = vmatpush.xpose.msk.msra.mxu3 %vm574_vm0, %v529_v38 }
  0x51   : > { %1186 = vmatpush.xpose.msk.msra.mxu0 %vm574_vm0, %v512_v39  ;;  %1243 = vmatpush.xpose.msk.msra.mxu2 %vm574_vm0, %v512_v39 }
  0x52   : > { %1208 = vmatpush.xpose.msk.msra.mxu1 %vm574_vm0, %v528_v40  ;;  %1259 = vmatpush.xpose.msk.msra.mxu3 %vm574_vm0, %v528_v40 }
  0x54   : > { %1187 = vmatmul.msk.f32.vlgmr.msra.gmra.mxu0 %vm574_vm0, %v498_v42  ;;  %1190 = vmatmul.msk.f32.vlgmr.msra.gmra.mxu2 %vm574_vm0, %v501_v43 }
  0x55   : > { %1209 = vmatmul.msk.f32.vlgmr.msra.gmra.mxu1 %vm574_vm0, %v498_v42  ;;  %1212 = vmatmul.msk.f32.vlgmr.msra.gmra.mxu3 %vm574_vm0, %v501_v43 }
  0x5c   : > { %1188 = vmatmul.msk.f32.gmra.mxu0 %vm574_vm0, %v499_v44  ;;  %1191 = vmatmul.msk.f32.gmra.mxu2 %vm574_vm0, %v502_v45 }
  0x5d   : > { %1210 = vmatmul.msk.f32.gmra.mxu1 %vm574_vm0, %v499_v44  ;;  %1213 = vmatmul.msk.f32.gmra.mxu3 %vm574_vm0, %v502_v45 }
  0x64   : > { %1189 = vmatmul.msk.f32.gmra.mxu0 %vm574_vm0, %v500_v47  ;;  %1192 = vmatmul.msk.f32.gmra.mxu2 %vm574_vm0, %v503_v48 }
  0x65   : > { %1211 = vmatmul.msk.f32.gmra.mxu1 %vm574_vm0, %v500_v47  ;;  %1214 = vmatmul.msk.f32.gmra.mxu3 %vm574_vm0, %v503_v48 }
  0x6a   : > { %v789_v51 = vpop.permute.xlu2 %788 }
  0x72   : > { %v1619_v56 = vpop.permute.xlu2 %792 }
  0x7d   : > { %v552_v3 = vpop.permute.xlu2 %551 }
  0x80   : > { %v562_v49 = vpop.permute.xlu0 %561  ;;  %v572_v50 = vpop.permute.xlu1 %571 }
  0x86   : > { %v777_v27 = vpop.permute.xlu2 %776 }
  0x89   : > { %v567_v52 = vpop.permute.xlu0 %566 }
  0x8a   : > { %v785_v53 = vpop.permute.xlu1 %784 }
  0x91   : > { %v1621_v60 = vpop.permute.xlu0 %848 }
  0x95   : > { %v547_v61 = vpop.permute.xlu1 %546 }
  0x99   : > { %v557_v10 = vpop.permute.xlu0 %556 }
  0x9e   : > { %v773_v28 = vpop.permute.xlu1 %772 }
  0xa2   : > { %v781_v42 = vpop.permute.xlu0 %780 }
  0xd1   : > { %v706_v54 = vpop.f32.mrf.mxu0 }
  0xd2   : > { %v741_v55 = vpop.f32.mrf.mxu1  ;;  %v707_v63 = vadd.f32 %v706_v54, %v547_v61 }
  0xd3   : > { %v742_v0 = vadd.f32 %v741_v55, %v547_v61 }
  0xd4   : > { %1298 = vtanh.f32 %v707_v63 }
  0xd5   : > { %1300 = vtanh.f32 %v742_v0 }
  0xd7   : > { %v715_v57 = vpop.f32.mrf.mxu2 }
  0xd8   : > { %v750_v58 = vpop.f32.mrf.mxu3  ;;  %v716_v1 = vadd.f32 %v715_v57, %v562_v49 }
  0xd9   : > { %v709_v59 = vpop.f32.mrf.mxu0  ;;  %v751_v7 = vadd.f32 %v750_v58, %v562_v49 }
  0xda   : > { %v744_v62 = vpop.f32.mrf.mxu1  ;;  %1302 = vtanh.f32 %v716_v1  ;;  %v710_v9 = vadd.f32 %v709_v59, %v552_v3  ;;  %v1299_v14 = vpop.eup %1298 }
  0xdb   : > { %v745_v11 = vadd.f32 %v744_v62, %v552_v3  ;;  %v1301_v16 = vpop.eup %1300  ;;  %v795_v36 = vmul.f32 %v1299_v14, %v773_v28 }
  0xdc   : > { %v796_v41 = vmul.f32 %v1301_v16, %v773_v28 }
  0xdf   : > { %v718_v2 = vpop.f32.mrf.mxu2 }
  0xe0   : > { %v719_v4 = vadd.f32 %v718_v2, %v567_v52  ;;  %v753_v5 = vpop.f32.mrf.mxu3  ;;  %v1303_v20 = vpop.eup %1302 }
  0xe1   : > { %v754_v6 = vadd.f32 %v753_v5, %v567_v52  ;;  %v712_v8 = vpop.f32.mrf.mxu0  ;;  %v801_v32 = vmul.f32 %v1303_v20, %v785_v53 }
  0xe2   : > { %1304 = vtanh.f32 %v719_v4  ;;  %v713_v12 = vadd.f32 %v712_v8, %v557_v10  ;;  %v747_v13 = vpop.f32.mrf.mxu1 }
  0xe3   : > { %1306 = vtanh.f32 %v754_v6  ;;  %v748_v17 = vadd.f32 %v747_v13, %v557_v10 }
  0xe4   : > { %1308 = vtanh.f32 %v751_v7 }
  0xe5   : > { %1310 = vtanh.f32 %v710_v9 }
  0xe6   : > { %1312 = vtanh.f32 %v745_v11 }
  0xe7   : > { %v721_v15 = vpop.f32.mrf.mxu2  ;;  %1314 = vtanh.f32 %v713_v12 }
  0xe8   : > { %v722_v18 = vadd.f32 %v721_v15, %v572_v50  ;;  %v756_v19 = vpop.f32.mrf.mxu3  ;;  %v1305_v22 = vpop.eup %1304 }
  0xe9   : > { %v757_v21 = vadd.f32 %v756_v19, %v572_v50  ;;  %v1307_v23 = vpop.eup %1306  ;;  %v803_v26 = vmul.f32 %v1305_v22, %v789_v51  ;;  %v826_v22 = vpop.permute.xlu1 %825 }
  0xea   : > { %1316 = vtanh.f32 %v722_v18  ;;  %v1309_v24 = vpop.eup %1308  ;;  %v804_v30 = vmul.f32 %v1307_v23, %v789_v51 }
  0xeb   : > { %1318 = vtanh.f32 %v757_v21  ;;  %v1311_v25 = vpop.eup %1310  ;;  %v802_v34 = vmul.f32 %v1309_v24, %v785_v53  ;;  %v830_v38 = vadd.f32 %v803_v26, %v801_v32 }
  0xec   : > { %1320 = vtanh.f32 %v748_v17  ;;  %v1313_v29 = vpop.eup %1312  ;;  %v797_v35 = vmul.f32 %v1311_v25, %v777_v27 }
  0xed   : > { %v1315_v31 = vpop.eup %1314  ;;  %v798_v40 = vmul.f32 %v1313_v29, %v777_v27  ;;  %v838_v44 = vadd.f32 %v804_v30, %v802_v34 }
  0xee   : > { %v807_v48 = vadd.f32 %v797_v35, %v795_v36  ;;  %v799_v49 = vmul.f32 %v1315_v31, %v781_v42 }
  0xef   : > { %v815_v51 = vadd.f32 %v798_v40, %v796_v41 }
  0xf0   : > { %v1317_v33 = vpop.eup %1316  ;;  %v808_v57 = vadd.f32 %v807_v48, %v799_v49 }
  0xf1   : > { %v1319_v37 = vpop.eup %1318  ;;  %v805_v39 = vmul.f32 %v1317_v33, %v1619_v56 }
  0xf2   : > { %v1321_v43 = vpop.eup %1320  ;;  %v806_v45 = vmul.f32 %v1319_v37, %v1619_v56  ;;  %v809_v0 = vrot.slane %v808_v57, 4 }
  0xf3   : > { %v831_v46 = vadd.f32 %v830_v38, %v805_v39  ;;  %v800_v52 = vmul.f32 %v1321_v43, %v781_v42 }
  0xf4   : > { %v839_v47 = vadd.f32 %v838_v44, %v806_v45  ;;  %v810_v5 = vadd.f32 %v809_v0, %v808_v57 }
  0xf5   : > { %v832_v50 = vrot.slane %v831_v46, 4  ;;  %v816_v59 = vadd.f32 %v815_v51, %v800_v52 }
  0xf6   : > { %v840_v53 = vrot.slane %v839_v47, 4  ;;  %v811_v11 = vrot.slane %v810_v5, 2 }
  0xf7   : > { %v833_v54 = vadd.f32 %v832_v50, %v831_v46  ;;  %v817_v2 = vrot.slane %v816_v59, 4 }
  0xf8   : > { %v841_v55 = vadd.f32 %v840_v53, %v839_v47  ;;  %v812_v13 = vadd.f32 %v811_v11, %v810_v5  ;;  %v929_v47 = vld [vmem:[%s467_s24] sm:$0x3] }
  0xf9   : > { %v834_v58 = vrot.slane %v833_v54, 2  ;;  %v818_v7 = vadd.f32 %v817_v2, %v816_v59 }
  0xfa   : > { %v842_v61 = vrot.slane %v841_v55, 2  ;;  %v813_v18 = vrot.slane %v812_v13, 1 }
  0xfb   : > { %v835_v62 = vadd.f32 %v834_v58, %v833_v54  ;;  %v819_v12 = vrot.slane %v818_v7, 2 }
  0xfc   : > { %v843_v63 = vadd.f32 %v842_v61, %v841_v55  ;;  %v814_v21 = vadd.f32 %v813_v18, %v812_v13  ;;  %v968_v18 = vstv %s1170_s25 }
  0xfd   : > { %v836_v1 = vrot.slane %v835_v62, 1  ;;  %v820_v14 = vadd.f32 %v819_v12, %v818_v7 }
  0xfe   : > { %v844_v56 = vrot.slane %v843_v63, 1  ;;  %v828_v24 = vadd.f32 %v826_v22, %v814_v21 }
  0xff   : > { %v837_v3 = vadd.f32 %v836_v1, %v835_v62  ;;  %v821_v20 = vrot.slane %v820_v14, 1  ;;  %v965_v1 = vlaneseq }
 0x100   : > { %v845_v4 = vadd.f32 %v844_v56, %v843_v63  ;;  %v1215_v31 = vmul.f32 -1.442695, %v828_v24 }
 0x101   : > { %v851_v6 = vadd.f32 %v1621_v60, %v837_v3  ;;  %v822_v23 = vadd.f32 %v821_v20, %v820_v14  ;;  %v966_v5 = vand.u32 127, %v965_v1 }
 0x102   : > { %v852_v8 = vadd.f32 %v1621_v60, %v845_v4 }
 0x103   : > { %v1217_v9 = vmul.f32 -1.442695, %v851_v6  ;;  %v829_v27 = vadd.f32 %v826_v22, %v822_v23  ;;  %v967_v12 = vadd.s32 128, %v966_v5 }
 0x104   : > { %v1218_v10 = vmul.f32 -1.442695, %v852_v8 }
 0x105   : > { %1322 = vpow2.f32 %v1217_v9  ;;  %v1216_v34 = vmul.f32 -1.442695, %v829_v27 }
 0x106   : > { %1324 = vpow2.f32 %v1218_v10 }
 0x10b   : > { %v1323_v15 = vpop.eup %1322 }
 0x10c   : > { %v1325_v16 = vpop.eup %1324  ;;  %v897_v17 = vadd.f32 1.0, %v1323_v15 }
 0x10d   : > { %v898_v19 = vadd.f32 1.0, %v1325_v16 }
 0x10e   : > { %1326 = vrcp.f32 %v897_v17  ;;  %vm904_vm3 = vweird.f32 %v897_v17  ;;  %v910_v37 = vand.u32 2147483648, %v897_v17  ;;  %v908_v41 = vand.u32 2147483647, %v897_v17 }
 0x10f   : > { %1328 = vrcp.f32 %v898_v19  ;;  %v925_v33 = vand.u32 2147483648, %v898_v19  ;;  %v923_v36 = vand.u32 2147483647, %v898_v19  ;;  %vm919_vm5 = vweird.f32 %v898_v19 }
 0x110   : > { %1330 = vpow2.f32 %v1215_v31  ;;  %v911_v45 = vor.u32 1.1754944e-38, %v910_v37  ;;  %vm909_vm9 = vcmp.eq.f32.partialorder %v908_v41, 8.507059e+37  ;;  %v969_v31 = vadd.s32 %v968_v18, %v966_v5 }
 0x111   : > { %v926_v42 = vor.u32 1.1754944e-38, %v925_v33  ;;  %1332 = vpow2.f32 %v1216_v34  ;;  %vm924_vm7 = vcmp.eq.f32.partialorder %v923_v36, 8.507059e+37 }
 0x114   : > { %v1327_v60 = vpop.eup %1326 }
 0x115   : > { %v1329_v25 = vpop.eup %1328  ;;  %v900_v26 = vmul.f32 %v1327_v60, %v897_v17  ;;  %vm905_vm1 = vweird.f32 %v1327_v60 }
 0x116   : > { %v915_v28 = vmul.f32 %v1329_v25, %v898_v19  ;;  %vm920_vm2 = vweird.f32 %v1329_v25  ;;  %vm1627_vm4 = vmor %vm904_vm3, %vm905_vm1  ;;  %v1331_v50 = vpop.eup %1330 }
 0x117   : > { %v901_v29 = vsub.f32 1.0, %v900_v26  ;;  %vm921_vm6 = vmor %vm919_vm5, %vm920_vm2  ;;  %v1333_v52 = vpop.eup %1332  ;;  %v859_v54 = vadd.f32 1.0, %v1331_v50 }
 0x118   : > { %v916_v30 = vsub.f32 1.0, %v915_v28  ;;  %v860_v57 = vadd.f32 1.0, %v1333_v52 }
 0x119   : > { %v902_v32 = vmul.f32 %v1327_v60, %v901_v29  ;;  %vm866_vm0 = vweird.f32 %v859_v54  ;;  %v872_v19 = vand.u32 2147483648, %v859_v54  ;;  %v870_v23 = vand.u32 2147483647, %v859_v54 }
 0x11a   : > { %v917_v35 = vmul.f32 %v1329_v25, %v916_v30  ;;  %v887_v20 = vand.u32 2147483648, %v860_v57  ;;  %vm881_vm2 = vweird.f32 %v860_v57 }
 0x11b   : > { %v903_v38 = vadd.f32 %v1327_v60, %v902_v32  ;;  %v873_v29 = vor.u32 1.1754944e-38, %v872_v19 }
 0x11c   : > { %v918_v40 = vadd.f32 %v1329_v25, %v917_v35  ;;  %v888_v30 = vor.u32 1.1754944e-38, %v887_v20 }
 0x11d   : > { %v907_v43 = vsel %vm1627_vm4, %v1327_v60, %v903_v38  ;;  %v885_v60 = vand.u32 2147483647, %v860_v57  ;;  %vm871_vm4 = vcmp.eq.f32.partialorder %v870_v23, 8.507059e+37 }
 0x11e   : > { %v922_v44 = vsel %vm921_vm6, %v1329_v25, %v918_v40  ;;  %v912_v49 = vsel %vm909_vm9, %v911_v45, %v907_v43  ;;  %v970_v25 = vadd.s32 %v968_v18, %v967_v12  ;;  %vm1646_vm9 = vcmp.lt.s32.totalorder %v965_v1, 256 }
 0x11f   : > { %v927_v46 = vsel %vm924_vm7, %v926_v42, %v922_v44  ;;  %vm886_vm5 = vcmp.eq.f32.partialorder %v885_v60, 8.507059e+37  ;;  %vm971_vm7 = vcmp.lt.s32.totalorder %v969_v31, 512 }
 0x120   : > { %v932_v48 = vrot.slane %v927_v46, 7  ;;  %vm972_vm6 = vcmp.lt.s32.totalorder %v970_v25, 512 }
 0x122   : > { %v934_v51 = vsel %vm933_vm8, %v912_v49, %v932_v48 }
 0x123   : > { %v936_v53 = vsub.f32 %v929_v47, %v934_v51 }
 0x125   : > { %v1219_v55 = vmul.f32 -1.442695, %v936_v53 }
 0x127   : > { %1334 = vpow2.f32 %v1219_v55 }
 0x128   : > { %1336 = vrcp.f32 %v859_v54 }
 0x129   : > { %1338 = vrcp.f32 %v860_v57 }
 0x12d   : > { %v1335_v58 = vpop.eup %1334 }
 0x12e   : > { %v940_v59 = vadd.f32 1.0, %v1335_v58  ;;  %v1337_v61 = vpop.eup %1336 }
 0x12f   : > { %v1339_v62 = vpop.eup %1338  ;;  %v862_v63 = vmul.f32 %v1337_v61, %v859_v54  ;;  %vm867_vm12 = vweird.f32 %v1337_v61 }
 0x130   : > { %1340 = vrcp.f32 %v940_v59  ;;  %v877_v0 = vmul.f32 %v1339_v62, %v860_v57  ;;  %v952_v8 = vand.u32 2147483648, %v940_v59  ;;  %v950_v11 = vand.u32 2147483647, %v940_v59  ;;  %vm1639_vm1 = vmor %vm866_vm0, %vm867_vm12 }
 0x131   : > { %v863_v56 = vsub.f32 1.0, %v862_v63  ;;  %vm946_vm11 = vweird.f32 %v940_v59  ;;  %vm882_vm13 = vweird.f32 %v1339_v62 }
 0x132   : > { %v878_v3 = vsub.f32 1.0, %v877_v0  ;;  %v953_v15 = vor.u32 1.1754944e-38, %v952_v8  ;;  %vm951_vm15 = vcmp.eq.f32.partialorder %v950_v11, 8.507059e+37  ;;  %vm883_vm3 = vmor %vm881_vm2, %vm882_vm13 }
 0x133   : > { %v864_v7 = vmul.f32 %v1337_v61, %v863_v56 }
 0x134   : > { %v879_v9 = vmul.f32 %v1339_v62, %v878_v3 }
 0x135   : > { %v865_v14 = vadd.f32 %v1337_v61, %v864_v7 }
 0x136   : > { %v1341_v2 = vpop.eup %1340  ;;  %v880_v16 = vadd.f32 %v1339_v62, %v879_v9 }
 0x137   : > { %v942_v4 = vmul.f32 %v1341_v2, %v940_v59  ;;  %vm947_vm10 = vweird.f32 %v1341_v2  ;;  %v869_v26 = vsel %vm1639_vm1, %v1337_v61, %v865_v14 }
 0x138   : > { %vm948_vm14 = vmor %vm946_vm11, %vm947_vm10  ;;  %v884_v27 = vsel %vm883_vm3, %v1339_v62, %v880_v16  ;;  %v874_v34 = vsel %vm871_vm4, %v873_v29, %v869_v26 }
 0x139   : > { %v943_v6 = vsub.f32 1.0, %v942_v4  ;;  %v889_v35 = vsel %vm886_vm5, %v888_v30, %v884_v27 }
 0x13b   : > { %v944_v10 = vmul.f32 %v1341_v2, %v943_v6 }
 0x13d   : > { %v945_v13 = vadd.f32 %v1341_v2, %v944_v10 }
 0x13f   : > { %v949_v17 = vsel %vm948_vm14, %v1341_v2, %v945_v13 }
 0x140   : > { %v954_v21 = vsel %vm951_vm15, %v953_v15, %v949_v17 }
 0x141   : > { %v956_v24 = vsub.f32 1.0, %v954_v21 }
 0x143   : > { %v957_v28 = vmul.f32 %v956_v24, %v954_v21 }
 0x145   : > { %v959_v32 = vperm.slane %v957_v28, 0  ;;  %v960_v33 = vperm.slane %v957_v28, 1 }
 0x147   : > { %v963_v36 = vmul.f32 %v959_v32, %v874_v34  ;;  %v964_v37 = vmul.f32 %v960_v33, %v889_v35 }
 0x149   : > { %v974_v38 = vsel %vm972_vm6, %v964_v37, 0.0  ;;  %v973_v41 = vsel %vm971_vm7, %v963_v36, 0.0  ;;  %988 = sbr.rel (%p1220_p7) target bundleno = 347 (0x15b), region = 56 }
 0x14a   : > { %v977_v40 = vrot.slane %v974_v38, 7 }
 0x14c   : > { %v978_v42 = vsel %vm933_vm8, %v973_v41, %v977_v40 }
 0x14d   : > { %984 = vst.msk [vmem:[%s478_s10] sm:$0x3] %vm1646_vm9, %v978_v42 }
 0x14e   : > { %v989_v43 = vld [vmem:[%s1443_s14] ss:$8 sm:$0x3]  ;;  %v1221_v55 = vld [vmem:[%s1443_s14 + $0x1] ss:$8 sm:$0x3] }
 0x14f   : > { %v990_v44 = vadd.f32 %v989_v43, %v978_v42  ;;  %v995_v45 = vld [vmem:[%s445_s19] sm:$0x3]  ;;  %v1223_v58 = vld [vmem:[%s1443_s14 + $0x2] ss:$8 sm:$0x3] }
 0x150   : > { %v997_v46 = vperm.slane %v995_v45, 0  ;;  %v998_v47 = vperm.slane %v995_v45, 1  ;;  %v1013_v48 = vld [vmem:[%s456_s18] sm:$0x3] }
 0x151   : > { %991 = vst.msk [vmem:[%s1443_s14] ss:$8 sm:$0x3] %vm1646_vm9, %v990_v44  ;;  %v1015_v49 = vperm.slane %v1013_v48, 0  ;;  %v1016_v50 = vperm.slane %v1013_v48, 1 }
 0x152   : > { %v1001_v51 = vmul.f32 %v997_v46, %v973_v41  ;;  %v1002_v52 = vmul.f32 %v998_v47, %v974_v38 }
 0x153   : > { %v1019_v53 = vmul.f32 %v1015_v49, %v973_v41  ;;  %v1020_v54 = vmul.f32 %v1016_v50, %v974_v38 }
 0x154   : > { %v1005_v57 = vrot.slane %v1002_v52, 7 }
 0x155   : > { %v1023_v59 = vrot.slane %v1020_v54, 7 }
 0x156   : > { %v1006_v61 = vsel %vm933_vm8, %v1001_v51, %v1005_v57 }
 0x157   : > { %v1008_v62 = vadd.f32 %v1221_v55, %v1006_v61  ;;  %v1024_v63 = vsel %vm933_vm8, %v1019_v53, %v1023_v59 }
 0x158   : > { %v1026_v0 = vadd.f32 %v1223_v58, %v1024_v63 }
 0x159   : > { %1222 = vst.msk [vmem:[%s1443_s14 + $0x1] ss:$8 sm:$0x3] %vm1646_vm9, %v1008_v62 }
 0x15a   : > { %1224 = vst.msk [vmem:[%s1443_s14 + $0x2] ss:$8 sm:$0x3] %vm1646_vm9, %v1026_v0 }
 0x15b PF: > { %s19_s29 = sadd.s32 1, %s1364_s29   ;;  %s1706_s27 = smov %s1360_s28 }
 0x15c   : > { %p16_p8 = scmp.ge.s32.totalorder %s19_s29, 4   ;;  %s1707_s28 = smov %s1709_s30 }
 0x15e   :  { %18 = sbr.rel (!%p16_p8) target bundleno = 2 (0x2), region = 109 }

</bundles_post_ra>
